<compile_context>
chip_gen: v7x
topology: tpu7x:2x2x1
jax: 0.10.0
libtpu: 0.0.40
codegen_flags: <defaults>
</compile_context>

<pallas_src>
import jax
import jax.numpy as jnp
from jax.experimental import pallas as pl
from jax.experimental.pallas import tpu as pltpu

# ----------------------------- hyper params ---------------------------------
CHAR_SIZE = 32
EMBEDDING_SIZE = 32                     # E
LSTM_HIDDEN_SIZE = 32                   # H
LINEAR_HIDDEN_SIZE = 2 * LSTM_HIDDEN_SIZE   # 2H, bi-LSTM feature width
BATCH = 2                               # B
SEQ = 8                                 # T

E = EMBEDDING_SIZE
H = LSTM_HIDDEN_SIZE
G = 4 * H                               # gate block width [i|f|g|o]
B = BATCH
T = SEQ
R = 2 * B                               # rows per timestep: seq A (0:B) + seq B (B:2B)

_VMEM = pl.BlockSpec(memory_space=pltpu.MemorySpace.VMEM)


# ------------------------------ kernel helpers --------------------------------
def _gate_apply(gates, c):
    """gates: (2R, 4H) pre-activations (g columns pre-scaled by 2), c: (2R, H)."""
    sg = jax.nn.sigmoid(gates)               # single EUP pass over the gate block
    i = sg[:, 0 * H:1 * H]
    f = sg[:, 1 * H:2 * H]
    g = 2.0 * sg[:, 2 * H:3 * H] - 1.0       # tanh(x) = 2*sigmoid(2x) - 1
    o = sg[:, 3 * H:4 * H]
    c_new = f * c + i * g
    h_new = o * jnp.tanh(c_new)
    return h_new, c_new


def _bilstm_recurrence(xw, whh_cat_bf16, seq_ref=None):
    """Bidirectional LSTM recurrence over both sequences at once.

    xw:          (T*R, 8H) f32 pre-activations (x @ [Wih_fw | Wih_bw] + bias),
                 row index t*R + r  (r < B: seq A, r >= B: seq B).
    whh_cat:     (H, 8H) bf16 = [W_hh_fw | W_hh_bw].
    seq_ref:     optional VMEM scratch (T*R, 2H); if given, the full sequence
                 [h_fw(t) | h_bw(t)] is stored there and None is returned.
                 Otherwise returns the time-mean (R, 2H) f32.
    """
    # Hoisted per-step (2R, 4H) blocks: fw rows take time t, bw rows time T-1-t.
    pre = [jnp.concatenate([xw[t * R:(t + 1) * R, 0:G],
                            xw[(T - 1 - t) * R:(T - t) * R, G:2 * G]], axis=0)
           for t in range(T)]

    c = jnp.zeros((2 * R, H), jnp.float32)   # rows 0:R forward, R:2R backward
    h = None
    sum_f = jnp.zeros((R, H), jnp.float32)
    sum_b = jnp.zeros((R, H), jnp.float32)

    for t in range(T):                       # fully unrolled: T=8, static
        tb = T - 1 - t
        if t == 0:
            gates = pre[0]                   # h0 == 0 -> recurrent term is zero
        else:
            gg = jnp.dot(h.astype(jnp.bfloat16), whh_cat_bf16,
                         preferred_element_type=jnp.float32)          # (2R, 8H)
            rec = jnp.concatenate([gg[0:R, 0:G], gg[R:2 * R, G:2 * G]], axis=0)
            gates = pre[t] + rec
        h, c = _gate_apply(gates, c)

        if seq_ref is not None:
            # Bi-LSTM output at time s is [h_fw(s) | h_bw(s)].
            seq_ref[t * R:(t + 1) * R, 0:H] = h[0:R, :]
            seq_ref[tb * R:(tb + 1) * R, H:2 * H] = h[R:2 * R, :]
        else:
            sum_f = sum_f + h[0:R, :]
            sum_b = sum_b + h[R:2 * R, :]

    if seq_ref is None:
        return jnp.concatenate([sum_f, sum_b], axis=1) * (1.0 / T)     # (R, 2H)
    return None


# ------------------------------ fused kernel ---------------------------------
def _siamese_kernel(ids_ref,                              # (T*R, 1) int32
                    proj0_ref, b0_ref, whh0_ref,          # layer 0
                    wih1_ref, b1_ref, whh1_ref,           # layer 1
                    wd_ref, bd_ref,                       # dense head
                    out_ref,                              # (B, 1) f32
                    seq_ref):                             # scratch (T*R, 2H) f32
    # Fused embedding gather + layer-0 input projection: one-hot(ids) @ PROJ0,
    # where PROJ0 = embedding_table @ [W_ih_fw | W_ih_bw] was pre-fused at init.
    ids = ids_ref[...]                                                   # (T*R, 1)
    eq = jax.lax.broadcasted_iota(jnp.int32, (T * R, CHAR_SIZE), 1) == ids
    onehot = jnp.where(eq, 1.0, 0.0).astype(jnp.bfloat16)                # (T*R, C)
    xw0 = jnp.dot(onehot, proj0_ref[...],
                  preferred_element_type=jnp.float32) + b0_ref[...]      # (T*R, 8H)

    # Layer 0: full sequence into VMEM scratch.
    _bilstm_recurrence(xw0, whh0_ref[...], seq_ref=seq_ref)

    # Inter-layer dropout (p=0.2) is identity at inference.
    x1 = seq_ref[...].astype(jnp.bfloat16)                               # (T*R, 2H)
    xw1 = jnp.dot(x1, wih1_ref[...],
                  preferred_element_type=jnp.float32) + b1_ref[...]      # (T*R, 8H)

    # Layer 1: only the time-mean is needed (feeds the dense head).
    avg = _bilstm_recurrence(xw1, whh1_ref[...], seq_ref=None)           # (R, 2H)

    dense = jnp.tanh(
        jnp.dot(avg.astype(jnp.bfloat16), wd_ref[...],
                preferred_element_type=jnp.float32) + bd_ref[...])       # (R, 2H)
    # Post-dense dropout (p=0.4) is identity at inference.

    oa = dense[0:B, :]
    ob = dense[B:2 * B, :]
    dot = jnp.sum(oa * ob, axis=1, keepdims=True)
    na = jnp.maximum(jnp.sqrt(jnp.sum(oa * oa, axis=1, keepdims=True)), 1e-8)
    nb = jnp.maximum(jnp.sqrt(jnp.sum(ob * ob, axis=1, keepdims=True)), 1e-8)
    out_ref[...] = dot / (na * nb)


# ------------------------------ parameters -----------------------------------
def _gscale(w):
    """Scale the g-gate (tanh) columns by 2 (gate order [i|f|g|o]) so the
    kernel can use tanh(x) = 2*sigmoid(2x) - 1 with a single sigmoid."""
    return w.at[:, 2 * H:3 * H].multiply(2.0)


def init_params(key):
    k = 1.0 / jnp.sqrt(jnp.float32(H))
    kd = 1.0 / jnp.sqrt(jnp.float32(LINEAR_HIDDEN_SIZE))
    keys = jax.random.split(key, 32)
    ki = iter(keys)

    def u(shape, scale):
        return jax.random.uniform(next(ki), shape, jnp.float32, -scale, scale)

    emb = jax.random.normal(next(ki), (CHAR_SIZE, E), jnp.float32)

    params = {}
    for layer, d_in in ((0, E), (1, 2 * H)):
        # TODO(synk): when importing PyTorch weights use W_ih^T / W_hh^T and
        # set each per-direction bias to b_ih + b_hh before the g-gate scaling.
        wih_f = _gscale(u((d_in, G), k))
        whh_f = _gscale(u((H, G), k))
        b_f = _gscale(u((1, G), k))
        wih_b = _gscale(u((d_in, G), k))
        whh_b = _gscale(u((H, G), k))
        b_b = _gscale(u((1, G), k))

        wih_cat = jnp.concatenate([wih_f, wih_b], axis=1)                # (d_in, 8H)
        params[f"whh{layer}_cat"] = jnp.concatenate(
            [whh_f, whh_b], axis=1).astype(jnp.bfloat16)                 # (H, 8H)
        params[f"b{layer}_cat"] = jnp.concatenate([b_f, b_b], axis=1)    # (1, 8H) f32

        if layer == 0:
            # Fuse embedding lookup with the layer-0 input projection:
            # PROJ0[c, :] = embedding[c] @ [W_ih_fw | W_ih_bw]
            params["proj0"] = jnp.dot(emb, wih_cat).astype(jnp.bfloat16)  # (C, 8H)
        else:
            params["wih1_cat"] = wih_cat.astype(jnp.bfloat16)             # (2H, 8H)

    params["dense_w_t"] = u((2 * H, 2 * H), kd).astype(jnp.bfloat16)  # stored as W^T
    params["dense_b"] = u((1, 2 * H), kd)
    return params


# ------------------------------ forward pass ---------------------------------
def siamese_forward(params, a_ids, b_ids):
    # Only trivial int32 plumbing stays outside the kernel: stack both
    # sequences and go time-major, row index t*R + r  (r < B: seq A).
    ids = jnp.concatenate([a_ids, b_ids], axis=0)          # (R, T) int32
    ids_tm = ids.T.reshape(T * R, 1)                       # (T*R, 1)

    cos = pl.pallas_call(
        _siamese_kernel,
        out_shape=jax.ShapeDtypeStruct((B, 1), jnp.float32),
        in_specs=[_VMEM] * 9,
        out_specs=_VMEM,
        scratch_shapes=[pltpu.VMEM((T * R, 2 * H), jnp.float32)],
    )(ids_tm,
      params["proj0"], params["b0_cat"], params["whh0_cat"],
      params["wih1_cat"], params["b1_cat"], params["whh1_cat"],
      params["dense_w_t"], params["dense_b"])
    return cos[:, 0]                                        # (B,)


# ----------------------------------- main ------------------------------------
if __name__ == "__main__":
    key = jax.random.PRNGKey(0)
    kp, ka, kb = jax.random.split(key, 3)
    params = init_params(kp)
    a_ids = jax.random.randint(ka, (BATCH, SEQ), 0, CHAR_SIZE, dtype=jnp.int32)
    b_ids = jax.random.randint(kb, (BATCH, SEQ), 0, CHAR_SIZE, dtype=jnp.int32)

    cosine = jax.jit(siamese_forward)(params, a_ids, b_ids)
    cosine = jax.block_until_ready(cosine)

    assert cosine.shape == (BATCH,)
    assert bool(jnp.all(jnp.isfinite(cosine)))
    assert bool(jnp.all(jnp.abs(cosine) <= 1.0 + 1e-5))
    print("KERNEL_OK")
</pallas_src>

<mosaic_0001>
module attributes {stable_mosaic.version = 11 : i64} {
  func.func @_siamese_kernel(%arg0: memref<32x1xi32, #tpu.memory_space<vmem>>, %arg1: memref<32x256xbf16, #tpu.memory_space<vmem>>, %arg2: memref<1x256xf32, #tpu.memory_space<vmem>>, %arg3: memref<32x256xbf16, #tpu.memory_space<vmem>>, %arg4: memref<64x256xbf16, #tpu.memory_space<vmem>>, %arg5: memref<1x256xf32, #tpu.memory_space<vmem>>, %arg6: memref<32x256xbf16, #tpu.memory_space<vmem>>, %arg7: memref<64x64xbf16, #tpu.memory_space<vmem>>, %arg8: memref<1x64xf32, #tpu.memory_space<vmem>>, %arg9: memref<2x1xf32, #tpu.memory_space<vmem>>, %arg10: memref<32x64xf32, #tpu.memory_space<vmem>>) attributes {dimension_semantics = [], scalar_prefetch = 0 : i64, scratch_operands = 1 : i64, tpu.core_type = #tpu.core_type<tc>} {
    %c0 = arith.constant 0 : index
    %c0_0 = arith.constant 0 : index
    %0 = vector.load %arg0[%c0, %c0_0] : memref<32x1xi32, #tpu.memory_space<vmem>>, vector<32x1xi32>
    %1 = tpu.iota {dimensions = array<i32: 1>} : vector<32x32xi32>
    %2 = vector.broadcast %0 : vector<32x1xi32> to vector<32x32xi32>
    %3 = arith.cmpi eq, %1, %2 : vector<32x32xi32>
    %cst = arith.constant 1.000000e+00 : f32
    %cst_1 = arith.constant 0.000000e+00 : f32
    %4 = vector.broadcast %cst : f32 to vector<32x32xf32>
    %5 = vector.broadcast %cst_1 : f32 to vector<32x32xf32>
    %6 = arith.select %3, %4, %5 : vector<32x32xi1>, vector<32x32xf32>
    %7 = arith.truncf %6 : vector<32x32xf32> to vector<32x32xbf16>
    %c0_2 = arith.constant 0 : index
    %c0_3 = arith.constant 0 : index
    %8 = vector.load %arg1[%c0_2, %c0_3] : memref<32x256xbf16, #tpu.memory_space<vmem>>, vector<32x256xbf16>
    %cst_4 = arith.constant dense<0.000000e+00> : vector<32x256xf32>
    %9 = tpu.matmul %7, %8, %cst_4 {dimension_numbers = #tpu.dot_dimension_numbers<[1], [0], [0], [1], [0, 0, 1, 1], [], []>} : vector<32x32xbf16>, vector<32x256xbf16>, vector<32x256xf32> -> vector<32x256xf32>
    %c0_5 = arith.constant 0 : index
    %c0_6 = arith.constant 0 : index
    %10 = vector.load %arg2[%c0_5, %c0_6] : memref<1x256xf32, #tpu.memory_space<vmem>>, vector<1x256xf32>
    %11 = vector.broadcast %10 : vector<1x256xf32> to vector<32x256xf32>
    %12 = arith.addf %9, %11 : vector<32x256xf32>
    %c0_7 = arith.constant 0 : index
    %c0_8 = arith.constant 0 : index
    %13 = vector.load %arg3[%c0_7, %c0_8] : memref<32x256xbf16, #tpu.memory_space<vmem>>, vector<32x256xbf16>
    %14 = vector.extract_strided_slice %12 {offsets = [0, 0], sizes = [4, 128], strides = [1, 1]} : vector<32x256xf32> to vector<4x128xf32>
    %15 = vector.extract_strided_slice %12 {offsets = [28, 128], sizes = [4, 128], strides = [1, 1]} : vector<32x256xf32> to vector<4x128xf32>
    %16 = tpu.concatenate %14, %15 in 0 : vector<4x128xf32>, vector<4x128xf32> -> vector<8x128xf32>
    %17 = vector.extract_strided_slice %12 {offsets = [4, 0], sizes = [4, 128], strides = [1, 1]} : vector<32x256xf32> to vector<4x128xf32>
    %18 = vector.extract_strided_slice %12 {offsets = [24, 128], sizes = [4, 128], strides = [1, 1]} : vector<32x256xf32> to vector<4x128xf32>
    %19 = tpu.concatenate %17, %18 in 0 : vector<4x128xf32>, vector<4x128xf32> -> vector<8x128xf32>
    %20 = vector.extract_strided_slice %12 {offsets = [8, 0], sizes = [4, 128], strides = [1, 1]} : vector<32x256xf32> to vector<4x128xf32>
    %21 = vector.extract_strided_slice %12 {offsets = [20, 128], sizes = [4, 128], strides = [1, 1]} : vector<32x256xf32> to vector<4x128xf32>
    %22 = tpu.concatenate %20, %21 in 0 : vector<4x128xf32>, vector<4x128xf32> -> vector<8x128xf32>
    %23 = vector.extract_strided_slice %12 {offsets = [12, 0], sizes = [4, 128], strides = [1, 1]} : vector<32x256xf32> to vector<4x128xf32>
    %24 = vector.extract_strided_slice %12 {offsets = [16, 128], sizes = [4, 128], strides = [1, 1]} : vector<32x256xf32> to vector<4x128xf32>
    %25 = tpu.concatenate %23, %24 in 0 : vector<4x128xf32>, vector<4x128xf32> -> vector<8x128xf32>
    %26 = vector.extract_strided_slice %12 {offsets = [16, 0], sizes = [4, 128], strides = [1, 1]} : vector<32x256xf32> to vector<4x128xf32>
    %27 = vector.extract_strided_slice %12 {offsets = [12, 128], sizes = [4, 128], strides = [1, 1]} : vector<32x256xf32> to vector<4x128xf32>
    %28 = tpu.concatenate %26, %27 in 0 : vector<4x128xf32>, vector<4x128xf32> -> vector<8x128xf32>
    %29 = vector.extract_strided_slice %12 {offsets = [20, 0], sizes = [4, 128], strides = [1, 1]} : vector<32x256xf32> to vector<4x128xf32>
    %30 = vector.extract_strided_slice %12 {offsets = [8, 128], sizes = [4, 128], strides = [1, 1]} : vector<32x256xf32> to vector<4x128xf32>
    %31 = tpu.concatenate %29, %30 in 0 : vector<4x128xf32>, vector<4x128xf32> -> vector<8x128xf32>
    %32 = vector.extract_strided_slice %12 {offsets = [24, 0], sizes = [4, 128], strides = [1, 1]} : vector<32x256xf32> to vector<4x128xf32>
    %33 = vector.extract_strided_slice %12 {offsets = [4, 128], sizes = [4, 128], strides = [1, 1]} : vector<32x256xf32> to vector<4x128xf32>
    %34 = tpu.concatenate %32, %33 in 0 : vector<4x128xf32>, vector<4x128xf32> -> vector<8x128xf32>
    %35 = vector.extract_strided_slice %12 {offsets = [28, 0], sizes = [4, 128], strides = [1, 1]} : vector<32x256xf32> to vector<4x128xf32>
    %36 = vector.extract_strided_slice %12 {offsets = [0, 128], sizes = [4, 128], strides = [1, 1]} : vector<32x256xf32> to vector<4x128xf32>
    %37 = tpu.concatenate %35, %36 in 0 : vector<4x128xf32>, vector<4x128xf32> -> vector<8x128xf32>
    %cst_9 = arith.constant 0.000000e+00 : f32
    %38 = vector.broadcast %cst_9 : f32 to vector<8x32xf32>
    %39 = arith.negf %16 : vector<8x128xf32>
    %40 = math.exp %39 : vector<8x128xf32>
    %cst_10 = arith.constant 1.000000e+00 : f32
    %41 = vector.broadcast %cst_10 : f32 to vector<8x128xf32>
    %42 = arith.addf %41, %40 : vector<8x128xf32>
    %43 = arith.divf %41, %42 : vector<8x128xf32>
    %44 = vector.extract_strided_slice %43 {offsets = [0, 0], sizes = [8, 32], strides = [1, 1]} : vector<8x128xf32> to vector<8x32xf32>
    %45 = vector.extract_strided_slice %43 {offsets = [0, 32], sizes = [8, 32], strides = [1, 1]} : vector<8x128xf32> to vector<8x32xf32>
    %46 = vector.extract_strided_slice %43 {offsets = [0, 64], sizes = [8, 32], strides = [1, 1]} : vector<8x128xf32> to vector<8x32xf32>
    %cst_11 = arith.constant 2.000000e+00 : f32
    %47 = vector.broadcast %cst_11 : f32 to vector<8x32xf32>
    %48 = arith.mulf %47, %46 : vector<8x32xf32>
    %cst_12 = arith.constant 1.000000e+00 : f32
    %49 = vector.broadcast %cst_12 : f32 to vector<8x32xf32>
    %50 = arith.subf %48, %49 : vector<8x32xf32>
    %51 = vector.extract_strided_slice %43 {offsets = [0, 96], sizes = [8, 32], strides = [1, 1]} : vector<8x128xf32> to vector<8x32xf32>
    %52 = arith.mulf %45, %38 : vector<8x32xf32>
    %53 = arith.mulf %44, %50 : vector<8x32xf32>
    %54 = arith.addf %52, %53 : vector<8x32xf32>
    %55 = math.tanh %54 : vector<8x32xf32>
    %56 = arith.mulf %51, %55 : vector<8x32xf32>
    %57 = vector.extract_strided_slice %56 {offsets = [0, 0], sizes = [4, 32], strides = [1, 1]} : vector<8x32xf32> to vector<4x32xf32>
    %c0_13 = arith.constant 0 : index
    %c0_14 = arith.constant 0 : index
    %58 = vector.load %arg10[%c0_13, %c0_14] : memref<32x64xf32, #tpu.memory_space<vmem>>, vector<4x32xf32>
    tpu.vector_store %arg10[%c0_13, %c0_14], %57 {strides = array<i32>} : memref<32x64xf32, #tpu.memory_space<vmem>>, vector<4x32xf32>,
    %59 = vector.extract_strided_slice %56 {offsets = [4, 0], sizes = [4, 32], strides = [1, 1]} : vector<8x32xf32> to vector<4x32xf32>
    %c28 = arith.constant 28 : index
    %c32 = arith.constant 32 : index
    %60 = vector.load %arg10[%c28, %c32] : memref<32x64xf32, #tpu.memory_space<vmem>>, vector<4x32xf32>
    tpu.vector_store %arg10[%c28, %c32], %59 {strides = array<i32>} : memref<32x64xf32, #tpu.memory_space<vmem>>, vector<4x32xf32>,
    %61 = arith.truncf %56 : vector<8x32xf32> to vector<8x32xbf16>
    %cst_15 = arith.constant dense<0.000000e+00> : vector<8x256xf32>
    %62 = tpu.matmul %61, %13, %cst_15 {dimension_numbers = #tpu.dot_dimension_numbers<[1], [0], [0], [1], [0, 0, 1, 1], [], []>} : vector<8x32xbf16>, vector<32x256xbf16>, vector<8x256xf32> -> vector<8x256xf32>
    %63 = vector.extract_strided_slice %62 {offsets = [0, 0], sizes = [4, 128], strides = [1, 1]} : vector<8x256xf32> to vector<4x128xf32>
    %64 = vector.extract_strided_slice %62 {offsets = [4, 128], sizes = [4, 128], strides = [1, 1]} : vector<8x256xf32> to vector<4x128xf32>
    %65 = tpu.concatenate %63, %64 in 0 : vector<4x128xf32>, vector<4x128xf32> -> vector<8x128xf32>
    %66 = arith.addf %19, %65 : vector<8x128xf32>
    %67 = arith.negf %66 : vector<8x128xf32>
    %68 = math.exp %67 : vector<8x128xf32>
    %cst_16 = arith.constant 1.000000e+00 : f32
    %69 = vector.broadcast %cst_16 : f32 to vector<8x128xf32>
    %70 = arith.addf %69, %68 : vector<8x128xf32>
    %71 = arith.divf %69, %70 : vector<8x128xf32>
    %72 = vector.extract_strided_slice %71 {offsets = [0, 0], sizes = [8, 32], strides = [1, 1]} : vector<8x128xf32> to vector<8x32xf32>
    %73 = vector.extract_strided_slice %71 {offsets = [0, 32], sizes = [8, 32], strides = [1, 1]} : vector<8x128xf32> to vector<8x32xf32>
    %74 = vector.extract_strided_slice %71 {offsets = [0, 64], sizes = [8, 32], strides = [1, 1]} : vector<8x128xf32> to vector<8x32xf32>
    %cst_17 = arith.constant 2.000000e+00 : f32
    %75 = vector.broadcast %cst_17 : f32 to vector<8x32xf32>
    %76 = arith.mulf %75, %74 : vector<8x32xf32>
    %cst_18 = arith.constant 1.000000e+00 : f32
    %77 = vector.broadcast %cst_18 : f32 to vector<8x32xf32>
    %78 = arith.subf %76, %77 : vector<8x32xf32>
    %79 = vector.extract_strided_slice %71 {offsets = [0, 96], sizes = [8, 32], strides = [1, 1]} : vector<8x128xf32> to vector<8x32xf32>
    %80 = arith.mulf %73, %54 : vector<8x32xf32>
    %81 = arith.mulf %72, %78 : vector<8x32xf32>
    %82 = arith.addf %80, %81 : vector<8x32xf32>
    %83 = math.tanh %82 : vector<8x32xf32>
    %84 = arith.mulf %79, %83 : vector<8x32xf32>
    %85 = vector.extract_strided_slice %84 {offsets = [0, 0], sizes = [4, 32], strides = [1, 1]} : vector<8x32xf32> to vector<4x32xf32>
    %c4 = arith.constant 4 : index
    %c0_19 = arith.constant 0 : index
    %86 = vector.load %arg10[%c4, %c0_19] : memref<32x64xf32, #tpu.memory_space<vmem>>, vector<4x32xf32>
    tpu.vector_store %arg10[%c4, %c0_19], %85 {strides = array<i32>} : memref<32x64xf32, #tpu.memory_space<vmem>>, vector<4x32xf32>,
    %87 = vector.extract_strided_slice %84 {offsets = [4, 0], sizes = [4, 32], strides = [1, 1]} : vector<8x32xf32> to vector<4x32xf32>
    %c24 = arith.constant 24 : index
    %c32_20 = arith.constant 32 : index
    %88 = vector.load %arg10[%c24, %c32_20] : memref<32x64xf32, #tpu.memory_space<vmem>>, vector<4x32xf32>
    tpu.vector_store %arg10[%c24, %c32_20], %87 {strides = array<i32>} : memref<32x64xf32, #tpu.memory_space<vmem>>, vector<4x32xf32>,
    %89 = arith.truncf %84 : vector<8x32xf32> to vector<8x32xbf16>
    %cst_21 = arith.constant dense<0.000000e+00> : vector<8x256xf32>
    %90 = tpu.matmul %89, %13, %cst_21 {dimension_numbers = #tpu.dot_dimension_numbers<[1], [0], [0], [1], [0, 0, 1, 1], [], []>} : vector<8x32xbf16>, vector<32x256xbf16>, vector<8x256xf32> -> vector<8x256xf32>
    %91 = vector.extract_strided_slice %90 {offsets = [0, 0], sizes = [4, 128], strides = [1, 1]} : vector<8x256xf32> to vector<4x128xf32>
    %92 = vector.extract_strided_slice %90 {offsets = [4, 128], sizes = [4, 128], strides = [1, 1]} : vector<8x256xf32> to vector<4x128xf32>
    %93 = tpu.concatenate %91, %92 in 0 : vector<4x128xf32>, vector<4x128xf32> -> vector<8x128xf32>
    %94 = arith.addf %22, %93 : vector<8x128xf32>
    %95 = arith.negf %94 : vector<8x128xf32>
    %96 = math.exp %95 : vector<8x128xf32>
    %cst_22 = arith.constant 1.000000e+00 : f32
    %97 = vector.broadcast %cst_22 : f32 to vector<8x128xf32>
    %98 = arith.addf %97, %96 : vector<8x128xf32>
    %99 = arith.divf %97, %98 : vector<8x128xf32>
    %100 = vector.extract_strided_slice %99 {offsets = [0, 0], sizes = [8, 32], strides = [1, 1]} : vector<8x128xf32> to vector<8x32xf32>
    %101 = vector.extract_strided_slice %99 {offsets = [0, 32], sizes = [8, 32], strides = [1, 1]} : vector<8x128xf32> to vector<8x32xf32>
    %102 = vector.extract_strided_slice %99 {offsets = [0, 64], sizes = [8, 32], strides = [1, 1]} : vector<8x128xf32> to vector<8x32xf32>
    %cst_23 = arith.constant 2.000000e+00 : f32
    %103 = vector.broadcast %cst_23 : f32 to vector<8x32xf32>
    %104 = arith.mulf %103, %102 : vector<8x32xf32>
    %cst_24 = arith.constant 1.000000e+00 : f32
    %105 = vector.broadcast %cst_24 : f32 to vector<8x32xf32>
    %106 = arith.subf %104, %105 : vector<8x32xf32>
    %107 = vector.extract_strided_slice %99 {offsets = [0, 96], sizes = [8, 32], strides = [1, 1]} : vector<8x128xf32> to vector<8x32xf32>
    %108 = arith.mulf %101, %82 : vector<8x32xf32>
    %109 = arith.mulf %100, %106 : vector<8x32xf32>
    %110 = arith.addf %108, %109 : vector<8x32xf32>
    %111 = math.tanh %110 : vector<8x32xf32>
    %112 = arith.mulf %107, %111 : vector<8x32xf32>
    %113 = vector.extract_strided_slice %112 {offsets = [0, 0], sizes = [4, 32], strides = [1, 1]} : vector<8x32xf32> to vector<4x32xf32>
    %c8 = arith.constant 8 : index
    %c0_25 = arith.constant 0 : index
    %114 = vector.load %arg10[%c8, %c0_25] : memref<32x64xf32, #tpu.memory_space<vmem>>, vector<4x32xf32>
    tpu.vector_store %arg10[%c8, %c0_25], %113 {strides = array<i32>} : memref<32x64xf32, #tpu.memory_space<vmem>>, vector<4x32xf32>,
    %115 = vector.extract_strided_slice %112 {offsets = [4, 0], sizes = [4, 32], strides = [1, 1]} : vector<8x32xf32> to vector<4x32xf32>
    %c20 = arith.constant 20 : index
    %c32_26 = arith.constant 32 : index
    %116 = vector.load %arg10[%c20, %c32_26] : memref<32x64xf32, #tpu.memory_space<vmem>>, vector<4x32xf32>
    tpu.vector_store %arg10[%c20, %c32_26], %115 {strides = array<i32>} : memref<32x64xf32, #tpu.memory_space<vmem>>, vector<4x32xf32>,
    %117 = arith.truncf %112 : vector<8x32xf32> to vector<8x32xbf16>
    %cst_27 = arith.constant dense<0.000000e+00> : vector<8x256xf32>
    %118 = tpu.matmul %117, %13, %cst_27 {dimension_numbers = #tpu.dot_dimension_numbers<[1], [0], [0], [1], [0, 0, 1, 1], [], []>} : vector<8x32xbf16>, vector<32x256xbf16>, vector<8x256xf32> -> vector<8x256xf32>
    %119 = vector.extract_strided_slice %118 {offsets = [0, 0], sizes = [4, 128], strides = [1, 1]} : vector<8x256xf32> to vector<4x128xf32>
    %120 = vector.extract_strided_slice %118 {offsets = [4, 128], sizes = [4, 128], strides = [1, 1]} : vector<8x256xf32> to vector<4x128xf32>
    %121 = tpu.concatenate %119, %120 in 0 : vector<4x128xf32>, vector<4x128xf32> -> vector<8x128xf32>
    %122 = arith.addf %25, %121 : vector<8x128xf32>
    %123 = arith.negf %122 : vector<8x128xf32>
    %124 = math.exp %123 : vector<8x128xf32>
    %cst_28 = arith.constant 1.000000e+00 : f32
    %125 = vector.broadcast %cst_28 : f32 to vector<8x128xf32>
    %126 = arith.addf %125, %124 : vector<8x128xf32>
    %127 = arith.divf %125, %126 : vector<8x128xf32>
    %128 = vector.extract_strided_slice %127 {offsets = [0, 0], sizes = [8, 32], strides = [1, 1]} : vector<8x128xf32> to vector<8x32xf32>
    %129 = vector.extract_strided_slice %127 {offsets = [0, 32], sizes = [8, 32], strides = [1, 1]} : vector<8x128xf32> to vector<8x32xf32>
    %130 = vector.extract_strided_slice %127 {offsets = [0, 64], sizes = [8, 32], strides = [1, 1]} : vector<8x128xf32> to vector<8x32xf32>
    %cst_29 = arith.constant 2.000000e+00 : f32
    %131 = vector.broadcast %cst_29 : f32 to vector<8x32xf32>
    %132 = arith.mulf %131, %130 : vector<8x32xf32>
    %cst_30 = arith.constant 1.000000e+00 : f32
    %133 = vector.broadcast %cst_30 : f32 to vector<8x32xf32>
    %134 = arith.subf %132, %133 : vector<8x32xf32>
    %135 = vector.extract_strided_slice %127 {offsets = [0, 96], sizes = [8, 32], strides = [1, 1]} : vector<8x128xf32> to vector<8x32xf32>
    %136 = arith.mulf %129, %110 : vector<8x32xf32>
    %137 = arith.mulf %128, %134 : vector<8x32xf32>
    %138 = arith.addf %136, %137 : vector<8x32xf32>
    %139 = math.tanh %138 : vector<8x32xf32>
    %140 = arith.mulf %135, %139 : vector<8x32xf32>
    %141 = vector.extract_strided_slice %140 {offsets = [0, 0], sizes = [4, 32], strides = [1, 1]} : vector<8x32xf32> to vector<4x32xf32>
    %c12 = arith.constant 12 : index
    %c0_31 = arith.constant 0 : index
    %142 = vector.load %arg10[%c12, %c0_31] : memref<32x64xf32, #tpu.memory_space<vmem>>, vector<4x32xf32>
    tpu.vector_store %arg10[%c12, %c0_31], %141 {strides = array<i32>} : memref<32x64xf32, #tpu.memory_space<vmem>>, vector<4x32xf32>,
    %143 = vector.extract_strided_slice %140 {offsets = [4, 0], sizes = [4, 32], strides = [1, 1]} : vector<8x32xf32> to vector<4x32xf32>
    %c16 = arith.constant 16 : index
    %c32_32 = arith.constant 32 : index
    %144 = vector.load %arg10[%c16, %c32_32] : memref<32x64xf32, #tpu.memory_space<vmem>>, vector<4x32xf32>
    tpu.vector_store %arg10[%c16, %c32_32], %143 {strides = array<i32>} : memref<32x64xf32, #tpu.memory_space<vmem>>, vector<4x32xf32>,
    %145 = arith.truncf %140 : vector<8x32xf32> to vector<8x32xbf16>
    %cst_33 = arith.constant dense<0.000000e+00> : vector<8x256xf32>
    %146 = tpu.matmul %145, %13, %cst_33 {dimension_numbers = #tpu.dot_dimension_numbers<[1], [0], [0], [1], [0, 0, 1, 1], [], []>} : vector<8x32xbf16>, vector<32x256xbf16>, vector<8x256xf32> -> vector<8x256xf32>
    %147 = vector.extract_strided_slice %146 {offsets = [0, 0], sizes = [4, 128], strides = [1, 1]} : vector<8x256xf32> to vector<4x128xf32>
    %148 = vector.extract_strided_slice %146 {offsets = [4, 128], sizes = [4, 128], strides = [1, 1]} : vector<8x256xf32> to vector<4x128xf32>
    %149 = tpu.concatenate %147, %148 in 0 : vector<4x128xf32>, vector<4x128xf32> -> vector<8x128xf32>
    %150 = arith.addf %28, %149 : vector<8x128xf32>
    %151 = arith.negf %150 : vector<8x128xf32>
    %152 = math.exp %151 : vector<8x128xf32>
    %cst_34 = arith.constant 1.000000e+00 : f32
    %153 = vector.broadcast %cst_34 : f32 to vector<8x128xf32>
    %154 = arith.addf %153, %152 : vector<8x128xf32>
    %155 = arith.divf %153, %154 : vector<8x128xf32>
    %156 = vector.extract_strided_slice %155 {offsets = [0, 0], sizes = [8, 32], strides = [1, 1]} : vector<8x128xf32> to vector<8x32xf32>
    %157 = vector.extract_strided_slice %155 {offsets = [0, 32], sizes = [8, 32], strides = [1, 1]} : vector<8x128xf32> to vector<8x32xf32>
    %158 = vector.extract_strided_slice %155 {offsets = [0, 64], sizes = [8, 32], strides = [1, 1]} : vector<8x128xf32> to vector<8x32xf32>
    %cst_35 = arith.constant 2.000000e+00 : f32
    %159 = vector.broadcast %cst_35 : f32 to vector<8x32xf32>
    %160 = arith.mulf %159, %158 : vector<8x32xf32>
    %cst_36 = arith.constant 1.000000e+00 : f32
    %161 = vector.broadcast %cst_36 : f32 to vector<8x32xf32>
    %162 = arith.subf %160, %161 : vector<8x32xf32>
    %163 = vector.extract_strided_slice %155 {offsets = [0, 96], sizes = [8, 32], strides = [1, 1]} : vector<8x128xf32> to vector<8x32xf32>
    %164 = arith.mulf %157, %138 : vector<8x32xf32>
    %165 = arith.mulf %156, %162 : vector<8x32xf32>
    %166 = arith.addf %164, %165 : vector<8x32xf32>
    %167 = math.tanh %166 : vector<8x32xf32>
    %168 = arith.mulf %163, %167 : vector<8x32xf32>
    %169 = vector.extract_strided_slice %168 {offsets = [0, 0], sizes = [4, 32], strides = [1, 1]} : vector<8x32xf32> to vector<4x32xf32>
    %c16_37 = arith.constant 16 : index
    %c0_38 = arith.constant 0 : index
    %170 = vector.load %arg10[%c16_37, %c0_38] : memref<32x64xf32, #tpu.memory_space<vmem>>, vector<4x32xf32>
    tpu.vector_store %arg10[%c16_37, %c0_38], %169 {strides = array<i32>} : memref<32x64xf32, #tpu.memory_space<vmem>>, vector<4x32xf32>,
    %171 = vector.extract_strided_slice %168 {offsets = [4, 0], sizes = [4, 32], strides = [1, 1]} : vector<8x32xf32> to vector<4x32xf32>
    %c12_39 = arith.constant 12 : index
    %c32_40 = arith.constant 32 : index
    %172 = vector.load %arg10[%c12_39, %c32_40] : memref<32x64xf32, #tpu.memory_space<vmem>>, vector<4x32xf32>
    tpu.vector_store %arg10[%c12_39, %c32_40], %171 {strides = array<i32>} : memref<32x64xf32, #tpu.memory_space<vmem>>, vector<4x32xf32>,
    %173 = arith.truncf %168 : vector<8x32xf32> to vector<8x32xbf16>
    %cst_41 = arith.constant dense<0.000000e+00> : vector<8x256xf32>
    %174 = tpu.matmul %173, %13, %cst_41 {dimension_numbers = #tpu.dot_dimension_numbers<[1], [0], [0], [1], [0, 0, 1, 1], [], []>} : vector<8x32xbf16>, vector<32x256xbf16>, vector<8x256xf32> -> vector<8x256xf32>
    %175 = vector.extract_strided_slice %174 {offsets = [0, 0], sizes = [4, 128], strides = [1, 1]} : vector<8x256xf32> to vector<4x128xf32>
    %176 = vector.extract_strided_slice %174 {offsets = [4, 128], sizes = [4, 128], strides = [1, 1]} : vector<8x256xf32> to vector<4x128xf32>
    %177 = tpu.concatenate %175, %176 in 0 : vector<4x128xf32>, vector<4x128xf32> -> vector<8x128xf32>
    %178 = arith.addf %31, %177 : vector<8x128xf32>
    %179 = arith.negf %178 : vector<8x128xf32>
    %180 = math.exp %179 : vector<8x128xf32>
    %cst_42 = arith.constant 1.000000e+00 : f32
    %181 = vector.broadcast %cst_42 : f32 to vector<8x128xf32>
    %182 = arith.addf %181, %180 : vector<8x128xf32>
    %183 = arith.divf %181, %182 : vector<8x128xf32>
    %184 = vector.extract_strided_slice %183 {offsets = [0, 0], sizes = [8, 32], strides = [1, 1]} : vector<8x128xf32> to vector<8x32xf32>
    %185 = vector.extract_strided_slice %183 {offsets = [0, 32], sizes = [8, 32], strides = [1, 1]} : vector<8x128xf32> to vector<8x32xf32>
    %186 = vector.extract_strided_slice %183 {offsets = [0, 64], sizes = [8, 32], strides = [1, 1]} : vector<8x128xf32> to vector<8x32xf32>
    %cst_43 = arith.constant 2.000000e+00 : f32
    %187 = vector.broadcast %cst_43 : f32 to vector<8x32xf32>
    %188 = arith.mulf %187, %186 : vector<8x32xf32>
    %cst_44 = arith.constant 1.000000e+00 : f32
    %189 = vector.broadcast %cst_44 : f32 to vector<8x32xf32>
    %190 = arith.subf %188, %189 : vector<8x32xf32>
    %191 = vector.extract_strided_slice %183 {offsets = [0, 96], sizes = [8, 32], strides = [1, 1]} : vector<8x128xf32> to vector<8x32xf32>
    %192 = arith.mulf %185, %166 : vector<8x32xf32>
    %193 = arith.mulf %184, %190 : vector<8x32xf32>
    %194 = arith.addf %192, %193 : vector<8x32xf32>
    %195 = math.tanh %194 : vector<8x32xf32>
    %196 = arith.mulf %191, %195 : vector<8x32xf32>
    %197 = vector.extract_strided_slice %196 {offsets = [0, 0], sizes = [4, 32], strides = [1, 1]} : vector<8x32xf32> to vector<4x32xf32>
    %c20_45 = arith.constant 20 : index
    %c0_46 = arith.constant 0 : index
    %198 = vector.load %arg10[%c20_45, %c0_46] : memref<32x64xf32, #tpu.memory_space<vmem>>, vector<4x32xf32>
    tpu.vector_store %arg10[%c20_45, %c0_46], %197 {strides = array<i32>} : memref<32x64xf32, #tpu.memory_space<vmem>>, vector<4x32xf32>,
    %199 = vector.extract_strided_slice %196 {offsets = [4, 0], sizes = [4, 32], strides = [1, 1]} : vector<8x32xf32> to vector<4x32xf32>
    %c8_47 = arith.constant 8 : index
    %c32_48 = arith.constant 32 : index
    %200 = vector.load %arg10[%c8_47, %c32_48] : memref<32x64xf32, #tpu.memory_space<vmem>>, vector<4x32xf32>
    tpu.vector_store %arg10[%c8_47, %c32_48], %199 {strides = array<i32>} : memref<32x64xf32, #tpu.memory_space<vmem>>, vector<4x32xf32>,
    %201 = arith.truncf %196 : vector<8x32xf32> to vector<8x32xbf16>
    %cst_49 = arith.constant dense<0.000000e+00> : vector<8x256xf32>
    %202 = tpu.matmul %201, %13, %cst_49 {dimension_numbers = #tpu.dot_dimension_numbers<[1], [0], [0], [1], [0, 0, 1, 1], [], []>} : vector<8x32xbf16>, vector<32x256xbf16>, vector<8x256xf32> -> vector<8x256xf32>
    %203 = vector.extract_strided_slice %202 {offsets = [0, 0], sizes = [4, 128], strides = [1, 1]} : vector<8x256xf32> to vector<4x128xf32>
    %204 = vector.extract_strided_slice %202 {offsets = [4, 128], sizes = [4, 128], strides = [1, 1]} : vector<8x256xf32> to vector<4x128xf32>
    %205 = tpu.concatenate %203, %204 in 0 : vector<4x128xf32>, vector<4x128xf32> -> vector<8x128xf32>
    %206 = arith.addf %34, %205 : vector<8x128xf32>
    %207 = arith.negf %206 : vector<8x128xf32>
    %208 = math.exp %207 : vector<8x128xf32>
    %cst_50 = arith.constant 1.000000e+00 : f32
    %209 = vector.broadcast %cst_50 : f32 to vector<8x128xf32>
    %210 = arith.addf %209, %208 : vector<8x128xf32>
    %211 = arith.divf %209, %210 : vector<8x128xf32>
    %212 = vector.extract_strided_slice %211 {offsets = [0, 0], sizes = [8, 32], strides = [1, 1]} : vector<8x128xf32> to vector<8x32xf32>
    %213 = vector.extract_strided_slice %211 {offsets = [0, 32], sizes = [8, 32], strides = [1, 1]} : vector<8x128xf32> to vector<8x32xf32>
    %214 = vector.extract_strided_slice %211 {offsets = [0, 64], sizes = [8, 32], strides = [1, 1]} : vector<8x128xf32> to vector<8x32xf32>
    %cst_51 = arith.constant 2.000000e+00 : f32
    %215 = vector.broadcast %cst_51 : f32 to vector<8x32xf32>
    %216 = arith.mulf %215, %214 : vector<8x32xf32>
    %cst_52 = arith.constant 1.000000e+00 : f32
    %217 = vector.broadcast %cst_52 : f32 to vector<8x32xf32>
    %218 = arith.subf %216, %217 : vector<8x32xf32>
    %219 = vector.extract_strided_slice %211 {offsets = [0, 96], sizes = [8, 32], strides = [1, 1]} : vector<8x128xf32> to vector<8x32xf32>
    %220 = arith.mulf %213, %194 : vector<8x32xf32>
    %221 = arith.mulf %212, %218 : vector<8x32xf32>
    %222 = arith.addf %220, %221 : vector<8x32xf32>
    %223 = math.tanh %222 : vector<8x32xf32>
    %224 = arith.mulf %219, %223 : vector<8x32xf32>
    %225 = vector.extract_strided_slice %224 {offsets = [0, 0], sizes = [4, 32], strides = [1, 1]} : vector<8x32xf32> to vector<4x32xf32>
    %c24_53 = arith.constant 24 : index
    %c0_54 = arith.constant 0 : index
    %226 = vector.load %arg10[%c24_53, %c0_54] : memref<32x64xf32, #tpu.memory_space<vmem>>, vector<4x32xf32>
    tpu.vector_store %arg10[%c24_53, %c0_54], %225 {strides = array<i32>} : memref<32x64xf32, #tpu.memory_space<vmem>>, vector<4x32xf32>,
    %227 = vector.extract_strided_slice %224 {offsets = [4, 0], sizes = [4, 32], strides = [1, 1]} : vector<8x32xf32> to vector<4x32xf32>
    %c4_55 = arith.constant 4 : index
    %c32_56 = arith.constant 32 : index
    %228 = vector.load %arg10[%c4_55, %c32_56] : memref<32x64xf32, #tpu.memory_space<vmem>>, vector<4x32xf32>
    tpu.vector_store %arg10[%c4_55, %c32_56], %227 {strides = array<i32>} : memref<32x64xf32, #tpu.memory_space<vmem>>, vector<4x32xf32>,
    %229 = arith.truncf %224 : vector<8x32xf32> to vector<8x32xbf16>
    %cst_57 = arith.constant dense<0.000000e+00> : vector<8x256xf32>
    %230 = tpu.matmul %229, %13, %cst_57 {dimension_numbers = #tpu.dot_dimension_numbers<[1], [0], [0], [1], [0, 0, 1, 1], [], []>} : vector<8x32xbf16>, vector<32x256xbf16>, vector<8x256xf32> -> vector<8x256xf32>
    %231 = vector.extract_strided_slice %230 {offsets = [0, 0], sizes = [4, 128], strides = [1, 1]} : vector<8x256xf32> to vector<4x128xf32>
    %232 = vector.extract_strided_slice %230 {offsets = [4, 128], sizes = [4, 128], strides = [1, 1]} : vector<8x256xf32> to vector<4x128xf32>
    %233 = tpu.concatenate %231, %232 in 0 : vector<4x128xf32>, vector<4x128xf32> -> vector<8x128xf32>
    %234 = arith.addf %37, %233 : vector<8x128xf32>
    %235 = arith.negf %234 : vector<8x128xf32>
    %236 = math.exp %235 : vector<8x128xf32>
    %cst_58 = arith.constant 1.000000e+00 : f32
    %237 = vector.broadcast %cst_58 : f32 to vector<8x128xf32>
    %238 = arith.addf %237, %236 : vector<8x128xf32>
    %239 = arith.divf %237, %238 : vector<8x128xf32>
    %240 = vector.extract_strided_slice %239 {offsets = [0, 0], sizes = [8, 32], strides = [1, 1]} : vector<8x128xf32> to vector<8x32xf32>
    %241 = vector.extract_strided_slice %239 {offsets = [0, 32], sizes = [8, 32], strides = [1, 1]} : vector<8x128xf32> to vector<8x32xf32>
    %242 = vector.extract_strided_slice %239 {offsets = [0, 64], sizes = [8, 32], strides = [1, 1]} : vector<8x128xf32> to vector<8x32xf32>
    %cst_59 = arith.constant 2.000000e+00 : f32
    %243 = vector.broadcast %cst_59 : f32 to vector<8x32xf32>
    %244 = arith.mulf %243, %242 : vector<8x32xf32>
    %cst_60 = arith.constant 1.000000e+00 : f32
    %245 = vector.broadcast %cst_60 : f32 to vector<8x32xf32>
    %246 = arith.subf %244, %245 : vector<8x32xf32>
    %247 = vector.extract_strided_slice %239 {offsets = [0, 96], sizes = [8, 32], strides = [1, 1]} : vector<8x128xf32> to vector<8x32xf32>
    %248 = arith.mulf %241, %222 : vector<8x32xf32>
    %249 = arith.mulf %240, %246 : vector<8x32xf32>
    %250 = arith.addf %248, %249 : vector<8x32xf32>
    %251 = math.tanh %250 : vector<8x32xf32>
    %252 = arith.mulf %247, %251 : vector<8x32xf32>
    %253 = vector.extract_strided_slice %252 {offsets = [0, 0], sizes = [4, 32], strides = [1, 1]} : vector<8x32xf32> to vector<4x32xf32>
    %c28_61 = arith.constant 28 : index
    %c0_62 = arith.constant 0 : index
    %254 = vector.load %arg10[%c28_61, %c0_62] : memref<32x64xf32, #tpu.memory_space<vmem>>, vector<4x32xf32>
    tpu.vector_store %arg10[%c28_61, %c0_62], %253 {strides = array<i32>} : memref<32x64xf32, #tpu.memory_space<vmem>>, vector<4x32xf32>,
    %255 = vector.extract_strided_slice %252 {offsets = [4, 0], sizes = [4, 32], strides = [1, 1]} : vector<8x32xf32> to vector<4x32xf32>
    %c0_63 = arith.constant 0 : index
    %c32_64 = arith.constant 32 : index
    %256 = vector.load %arg10[%c0_63, %c32_64] : memref<32x64xf32, #tpu.memory_space<vmem>>, vector<4x32xf32>
    tpu.vector_store %arg10[%c0_63, %c32_64], %255 {strides = array<i32>} : memref<32x64xf32, #tpu.memory_space<vmem>>, vector<4x32xf32>,
    %c0_65 = arith.constant 0 : index
    %c0_66 = arith.constant 0 : index
    %257 = vector.load %arg10[%c0_65, %c0_66] : memref<32x64xf32, #tpu.memory_space<vmem>>, vector<32x64xf32>
    %258 = arith.truncf %257 : vector<32x64xf32> to vector<32x64xbf16>
    %c0_67 = arith.constant 0 : index
    %c0_68 = arith.constant 0 : index
    %259 = vector.load %arg4[%c0_67, %c0_68] : memref<64x256xbf16, #tpu.memory_space<vmem>>, vector<64x256xbf16>
    %cst_69 = arith.constant dense<0.000000e+00> : vector<32x256xf32>
    %260 = tpu.matmul %258, %259, %cst_69 {dimension_numbers = #tpu.dot_dimension_numbers<[1], [0], [0], [1], [0, 0, 1, 1], [], []>} : vector<32x64xbf16>, vector<64x256xbf16>, vector<32x256xf32> -> vector<32x256xf32>
    %c0_70 = arith.constant 0 : index
    %c0_71 = arith.constant 0 : index
    %261 = vector.load %arg5[%c0_70, %c0_71] : memref<1x256xf32, #tpu.memory_space<vmem>>, vector<1x256xf32>
    %262 = vector.broadcast %261 : vector<1x256xf32> to vector<32x256xf32>
    %263 = arith.addf %260, %262 : vector<32x256xf32>
    %c0_72 = arith.constant 0 : index
    %c0_73 = arith.constant 0 : index
    %264 = vector.load %arg6[%c0_72, %c0_73] : memref<32x256xbf16, #tpu.memory_space<vmem>>, vector<32x256xbf16>
    %265 = vector.extract_strided_slice %263 {offsets = [0, 0], sizes = [4, 128], strides = [1, 1]} : vector<32x256xf32> to vector<4x128xf32>
    %266 = vector.extract_strided_slice %263 {offsets = [28, 128], sizes = [4, 128], strides = [1, 1]} : vector<32x256xf32> to vector<4x128xf32>
    %267 = tpu.concatenate %265, %266 in 0 : vector<4x128xf32>, vector<4x128xf32> -> vector<8x128xf32>
    %268 = vector.extract_strided_slice %263 {offsets = [4, 0], sizes = [4, 128], strides = [1, 1]} : vector<32x256xf32> to vector<4x128xf32>
    %269 = vector.extract_strided_slice %263 {offsets = [24, 128], sizes = [4, 128], strides = [1, 1]} : vector<32x256xf32> to vector<4x128xf32>
    %270 = tpu.concatenate %268, %269 in 0 : vector<4x128xf32>, vector<4x128xf32> -> vector<8x128xf32>
    %271 = vector.extract_strided_slice %263 {offsets = [8, 0], sizes = [4, 128], strides = [1, 1]} : vector<32x256xf32> to vector<4x128xf32>
    %272 = vector.extract_strided_slice %263 {offsets = [20, 128], sizes = [4, 128], strides = [1, 1]} : vector<32x256xf32> to vector<4x128xf32>
    %273 = tpu.concatenate %271, %272 in 0 : vector<4x128xf32>, vector<4x128xf32> -> vector<8x128xf32>
    %274 = vector.extract_strided_slice %263 {offsets = [12, 0], sizes = [4, 128], strides = [1, 1]} : vector<32x256xf32> to vector<4x128xf32>
    %275 = vector.extract_strided_slice %263 {offsets = [16, 128], sizes = [4, 128], strides = [1, 1]} : vector<32x256xf32> to vector<4x128xf32>
    %276 = tpu.concatenate %274, %275 in 0 : vector<4x128xf32>, vector<4x128xf32> -> vector<8x128xf32>
    %277 = vector.extract_strided_slice %263 {offsets = [16, 0], sizes = [4, 128], strides = [1, 1]} : vector<32x256xf32> to vector<4x128xf32>
    %278 = vector.extract_strided_slice %263 {offsets = [12, 128], sizes = [4, 128], strides = [1, 1]} : vector<32x256xf32> to vector<4x128xf32>
    %279 = tpu.concatenate %277, %278 in 0 : vector<4x128xf32>, vector<4x128xf32> -> vector<8x128xf32>
    %280 = vector.extract_strided_slice %263 {offsets = [20, 0], sizes = [4, 128], strides = [1, 1]} : vector<32x256xf32> to vector<4x128xf32>
    %281 = vector.extract_strided_slice %263 {offsets = [8, 128], sizes = [4, 128], strides = [1, 1]} : vector<32x256xf32> to vector<4x128xf32>
    %282 = tpu.concatenate %280, %281 in 0 : vector<4x128xf32>, vector<4x128xf32> -> vector<8x128xf32>
    %283 = vector.extract_strided_slice %263 {offsets = [24, 0], sizes = [4, 128], strides = [1, 1]} : vector<32x256xf32> to vector<4x128xf32>
    %284 = vector.extract_strided_slice %263 {offsets = [4, 128], sizes = [4, 128], strides = [1, 1]} : vector<32x256xf32> to vector<4x128xf32>
    %285 = tpu.concatenate %283, %284 in 0 : vector<4x128xf32>, vector<4x128xf32> -> vector<8x128xf32>
    %286 = vector.extract_strided_slice %263 {offsets = [28, 0], sizes = [4, 128], strides = [1, 1]} : vector<32x256xf32> to vector<4x128xf32>
    %287 = vector.extract_strided_slice %263 {offsets = [0, 128], sizes = [4, 128], strides = [1, 1]} : vector<32x256xf32> to vector<4x128xf32>
    %288 = tpu.concatenate %286, %287 in 0 : vector<4x128xf32>, vector<4x128xf32> -> vector<8x128xf32>
    %cst_74 = arith.constant 0.000000e+00 : f32
    %289 = vector.broadcast %cst_74 : f32 to vector<8x32xf32>
    %cst_75 = arith.constant 0.000000e+00 : f32
    %290 = vector.broadcast %cst_75 : f32 to vector<4x32xf32>
    %cst_76 = arith.constant 0.000000e+00 : f32
    %291 = vector.broadcast %cst_76 : f32 to vector<4x32xf32>
    %292 = arith.negf %267 : vector<8x128xf32>
    %293 = math.exp %292 : vector<8x128xf32>
    %cst_77 = arith.constant 1.000000e+00 : f32
    %294 = vector.broadcast %cst_77 : f32 to vector<8x128xf32>
    %295 = arith.addf %294, %293 : vector<8x128xf32>
    %296 = arith.divf %294, %295 : vector<8x128xf32>
    %297 = vector.extract_strided_slice %296 {offsets = [0, 0], sizes = [8, 32], strides = [1, 1]} : vector<8x128xf32> to vector<8x32xf32>
    %298 = vector.extract_strided_slice %296 {offsets = [0, 32], sizes = [8, 32], strides = [1, 1]} : vector<8x128xf32> to vector<8x32xf32>
    %299 = vector.extract_strided_slice %296 {offsets = [0, 64], sizes = [8, 32], strides = [1, 1]} : vector<8x128xf32> to vector<8x32xf32>
    %cst_78 = arith.constant 2.000000e+00 : f32
    %300 = vector.broadcast %cst_78 : f32 to vector<8x32xf32>
    %301 = arith.mulf %300, %299 : vector<8x32xf32>
    %cst_79 = arith.constant 1.000000e+00 : f32
    %302 = vector.broadcast %cst_79 : f32 to vector<8x32xf32>
    %303 = arith.subf %301, %302 : vector<8x32xf32>
    %304 = vector.extract_strided_slice %296 {offsets = [0, 96], sizes = [8, 32], strides = [1, 1]} : vector<8x128xf32> to vector<8x32xf32>
    %305 = arith.mulf %298, %289 : vector<8x32xf32>
    %306 = arith.mulf %297, %303 : vector<8x32xf32>
    %307 = arith.addf %305, %306 : vector<8x32xf32>
    %308 = math.tanh %307 : vector<8x32xf32>
    %309 = arith.mulf %304, %308 : vector<8x32xf32>
    %310 = vector.extract_strided_slice %309 {offsets = [0, 0], sizes = [4, 32], strides = [1, 1]} : vector<8x32xf32> to vector<4x32xf32>
    %311 = arith.addf %290, %310 : vector<4x32xf32>
    %312 = vector.extract_strided_slice %309 {offsets = [4, 0], sizes = [4, 32], strides = [1, 1]} : vector<8x32xf32> to vector<4x32xf32>
    %313 = arith.addf %291, %312 : vector<4x32xf32>
    %314 = arith.truncf %309 : vector<8x32xf32> to vector<8x32xbf16>
    %cst_80 = arith.constant dense<0.000000e+00> : vector<8x256xf32>
    %315 = tpu.matmul %314, %264, %cst_80 {dimension_numbers = #tpu.dot_dimension_numbers<[1], [0], [0], [1], [0, 0, 1, 1], [], []>} : vector<8x32xbf16>, vector<32x256xbf16>, vector<8x256xf32> -> vector<8x256xf32>
    %316 = vector.extract_strided_slice %315 {offsets = [0, 0], sizes = [4, 128], strides = [1, 1]} : vector<8x256xf32> to vector<4x128xf32>
    %317 = vector.extract_strided_slice %315 {offsets = [4, 128], sizes = [4, 128], strides = [1, 1]} : vector<8x256xf32> to vector<4x128xf32>
    %318 = tpu.concatenate %316, %317 in 0 : vector<4x128xf32>, vector<4x128xf32> -> vector<8x128xf32>
    %319 = arith.addf %270, %318 : vector<8x128xf32>
    %320 = arith.negf %319 : vector<8x128xf32>
    %321 = math.exp %320 : vector<8x128xf32>
    %cst_81 = arith.constant 1.000000e+00 : f32
    %322 = vector.broadcast %cst_81 : f32 to vector<8x128xf32>
    %323 = arith.addf %322, %321 : vector<8x128xf32>
    %324 = arith.divf %322, %323 : vector<8x128xf32>
    %325 = vector.extract_strided_slice %324 {offsets = [0, 0], sizes = [8, 32], strides = [1, 1]} : vector<8x128xf32> to vector<8x32xf32>
    %326 = vector.extract_strided_slice %324 {offsets = [0, 32], sizes = [8, 32], strides = [1, 1]} : vector<8x128xf32> to vector<8x32xf32>
    %327 = vector.extract_strided_slice %324 {offsets = [0, 64], sizes = [8, 32], strides = [1, 1]} : vector<8x128xf32> to vector<8x32xf32>
    %cst_82 = arith.constant 2.000000e+00 : f32
    %328 = vector.broadcast %cst_82 : f32 to vector<8x32xf32>
    %329 = arith.mulf %328, %327 : vector<8x32xf32>
    %cst_83 = arith.constant 1.000000e+00 : f32
    %330 = vector.broadcast %cst_83 : f32 to vector<8x32xf32>
    %331 = arith.subf %329, %330 : vector<8x32xf32>
    %332 = vector.extract_strided_slice %324 {offsets = [0, 96], sizes = [8, 32], strides = [1, 1]} : vector<8x128xf32> to vector<8x32xf32>
    %333 = arith.mulf %326, %307 : vector<8x32xf32>
    %334 = arith.mulf %325, %331 : vector<8x32xf32>
    %335 = arith.addf %333, %334 : vector<8x32xf32>
    %336 = math.tanh %335 : vector<8x32xf32>
    %337 = arith.mulf %332, %336 : vector<8x32xf32>
    %338 = vector.extract_strided_slice %337 {offsets = [0, 0], sizes = [4, 32], strides = [1, 1]} : vector<8x32xf32> to vector<4x32xf32>
    %339 = arith.addf %311, %338 : vector<4x32xf32>
    %340 = vector.extract_strided_slice %337 {offsets = [4, 0], sizes = [4, 32], strides = [1, 1]} : vector<8x32xf32> to vector<4x32xf32>
    %341 = arith.addf %313, %340 : vector<4x32xf32>
    %342 = arith.truncf %337 : vector<8x32xf32> to vector<8x32xbf16>
    %cst_84 = arith.constant dense<0.000000e+00> : vector<8x256xf32>
    %343 = tpu.matmul %342, %264, %cst_84 {dimension_numbers = #tpu.dot_dimension_numbers<[1], [0], [0], [1], [0, 0, 1, 1], [], []>} : vector<8x32xbf16>, vector<32x256xbf16>, vector<8x256xf32> -> vector<8x256xf32>
    %344 = vector.extract_strided_slice %343 {offsets = [0, 0], sizes = [4, 128], strides = [1, 1]} : vector<8x256xf32> to vector<4x128xf32>
    %345 = vector.extract_strided_slice %343 {offsets = [4, 128], sizes = [4, 128], strides = [1, 1]} : vector<8x256xf32> to vector<4x128xf32>
    %346 = tpu.concatenate %344, %345 in 0 : vector<4x128xf32>, vector<4x128xf32> -> vector<8x128xf32>
    %347 = arith.addf %273, %346 : vector<8x128xf32>
    %348 = arith.negf %347 : vector<8x128xf32>
    %349 = math.exp %348 : vector<8x128xf32>
    %cst_85 = arith.constant 1.000000e+00 : f32
    %350 = vector.broadcast %cst_85 : f32 to vector<8x128xf32>
    %351 = arith.addf %350, %349 : vector<8x128xf32>
    %352 = arith.divf %350, %351 : vector<8x128xf32>
    %353 = vector.extract_strided_slice %352 {offsets = [0, 0], sizes = [8, 32], strides = [1, 1]} : vector<8x128xf32> to vector<8x32xf32>
    %354 = vector.extract_strided_slice %352 {offsets = [0, 32], sizes = [8, 32], strides = [1, 1]} : vector<8x128xf32> to vector<8x32xf32>
    %355 = vector.extract_strided_slice %352 {offsets = [0, 64], sizes = [8, 32], strides = [1, 1]} : vector<8x128xf32> to vector<8x32xf32>
    %cst_86 = arith.constant 2.000000e+00 : f32
    %356 = vector.broadcast %cst_86 : f32 to vector<8x32xf32>
    %357 = arith.mulf %356, %355 : vector<8x32xf32>
    %cst_87 = arith.constant 1.000000e+00 : f32
    %358 = vector.broadcast %cst_87 : f32 to vector<8x32xf32>
    %359 = arith.subf %357, %358 : vector<8x32xf32>
    %360 = vector.extract_strided_slice %352 {offsets = [0, 96], sizes = [8, 32], strides = [1, 1]} : vector<8x128xf32> to vector<8x32xf32>
    %361 = arith.mulf %354, %335 : vector<8x32xf32>
    %362 = arith.mulf %353, %359 : vector<8x32xf32>
    %363 = arith.addf %361, %362 : vector<8x32xf32>
    %364 = math.tanh %363 : vector<8x32xf32>
    %365 = arith.mulf %360, %364 : vector<8x32xf32>
    %366 = vector.extract_strided_slice %365 {offsets = [0, 0], sizes = [4, 32], strides = [1, 1]} : vector<8x32xf32> to vector<4x32xf32>
    %367 = arith.addf %339, %366 : vector<4x32xf32>
    %368 = vector.extract_strided_slice %365 {offsets = [4, 0], sizes = [4, 32], strides = [1, 1]} : vector<8x32xf32> to vector<4x32xf32>
    %369 = arith.addf %341, %368 : vector<4x32xf32>
    %370 = arith.truncf %365 : vector<8x32xf32> to vector<8x32xbf16>
    %cst_88 = arith.constant dense<0.000000e+00> : vector<8x256xf32>
    %371 = tpu.matmul %370, %264, %cst_88 {dimension_numbers = #tpu.dot_dimension_numbers<[1], [0], [0], [1], [0, 0, 1, 1], [], []>} : vector<8x32xbf16>, vector<32x256xbf16>, vector<8x256xf32> -> vector<8x256xf32>
    %372 = vector.extract_strided_slice %371 {offsets = [0, 0], sizes = [4, 128], strides = [1, 1]} : vector<8x256xf32> to vector<4x128xf32>
    %373 = vector.extract_strided_slice %371 {offsets = [4, 128], sizes = [4, 128], strides = [1, 1]} : vector<8x256xf32> to vector<4x128xf32>
    %374 = tpu.concatenate %372, %373 in 0 : vector<4x128xf32>, vector<4x128xf32> -> vector<8x128xf32>
    %375 = arith.addf %276, %374 : vector<8x128xf32>
    %376 = arith.negf %375 : vector<8x128xf32>
    %377 = math.exp %376 : vector<8x128xf32>
    %cst_89 = arith.constant 1.000000e+00 : f32
    %378 = vector.broadcast %cst_89 : f32 to vector<8x128xf32>
    %379 = arith.addf %378, %377 : vector<8x128xf32>
    %380 = arith.divf %378, %379 : vector<8x128xf32>
    %381 = vector.extract_strided_slice %380 {offsets = [0, 0], sizes = [8, 32], strides = [1, 1]} : vector<8x128xf32> to vector<8x32xf32>
    %382 = vector.extract_strided_slice %380 {offsets = [0, 32], sizes = [8, 32], strides = [1, 1]} : vector<8x128xf32> to vector<8x32xf32>
    %383 = vector.extract_strided_slice %380 {offsets = [0, 64], sizes = [8, 32], strides = [1, 1]} : vector<8x128xf32> to vector<8x32xf32>
    %cst_90 = arith.constant 2.000000e+00 : f32
    %384 = vector.broadcast %cst_90 : f32 to vector<8x32xf32>
    %385 = arith.mulf %384, %383 : vector<8x32xf32>
    %cst_91 = arith.constant 1.000000e+00 : f32
    %386 = vector.broadcast %cst_91 : f32 to vector<8x32xf32>
    %387 = arith.subf %385, %386 : vector<8x32xf32>
    %388 = vector.extract_strided_slice %380 {offsets = [0, 96], sizes = [8, 32], strides = [1, 1]} : vector<8x128xf32> to vector<8x32xf32>
    %389 = arith.mulf %382, %363 : vector<8x32xf32>
    %390 = arith.mulf %381, %387 : vector<8x32xf32>
    %391 = arith.addf %389, %390 : vector<8x32xf32>
    %392 = math.tanh %391 : vector<8x32xf32>
    %393 = arith.mulf %388, %392 : vector<8x32xf32>
    %394 = vector.extract_strided_slice %393 {offsets = [0, 0], sizes = [4, 32], strides = [1, 1]} : vector<8x32xf32> to vector<4x32xf32>
    %395 = arith.addf %367, %394 : vector<4x32xf32>
    %396 = vector.extract_strided_slice %393 {offsets = [4, 0], sizes = [4, 32], strides = [1, 1]} : vector<8x32xf32> to vector<4x32xf32>
    %397 = arith.addf %369, %396 : vector<4x32xf32>
    %398 = arith.truncf %393 : vector<8x32xf32> to vector<8x32xbf16>
    %cst_92 = arith.constant dense<0.000000e+00> : vector<8x256xf32>
    %399 = tpu.matmul %398, %264, %cst_92 {dimension_numbers = #tpu.dot_dimension_numbers<[1], [0], [0], [1], [0, 0, 1, 1], [], []>} : vector<8x32xbf16>, vector<32x256xbf16>, vector<8x256xf32> -> vector<8x256xf32>
    %400 = vector.extract_strided_slice %399 {offsets = [0, 0], sizes = [4, 128], strides = [1, 1]} : vector<8x256xf32> to vector<4x128xf32>
    %401 = vector.extract_strided_slice %399 {offsets = [4, 128], sizes = [4, 128], strides = [1, 1]} : vector<8x256xf32> to vector<4x128xf32>
    %402 = tpu.concatenate %400, %401 in 0 : vector<4x128xf32>, vector<4x128xf32> -> vector<8x128xf32>
    %403 = arith.addf %279, %402 : vector<8x128xf32>
    %404 = arith.negf %403 : vector<8x128xf32>
    %405 = math.exp %404 : vector<8x128xf32>
    %cst_93 = arith.constant 1.000000e+00 : f32
    %406 = vector.broadcast %cst_93 : f32 to vector<8x128xf32>
    %407 = arith.addf %406, %405 : vector<8x128xf32>
    %408 = arith.divf %406, %407 : vector<8x128xf32>
    %409 = vector.extract_strided_slice %408 {offsets = [0, 0], sizes = [8, 32], strides = [1, 1]} : vector<8x128xf32> to vector<8x32xf32>
    %410 = vector.extract_strided_slice %408 {offsets = [0, 32], sizes = [8, 32], strides = [1, 1]} : vector<8x128xf32> to vector<8x32xf32>
    %411 = vector.extract_strided_slice %408 {offsets = [0, 64], sizes = [8, 32], strides = [1, 1]} : vector<8x128xf32> to vector<8x32xf32>
    %cst_94 = arith.constant 2.000000e+00 : f32
    %412 = vector.broadcast %cst_94 : f32 to vector<8x32xf32>
    %413 = arith.mulf %412, %411 : vector<8x32xf32>
    %cst_95 = arith.constant 1.000000e+00 : f32
    %414 = vector.broadcast %cst_95 : f32 to vector<8x32xf32>
    %415 = arith.subf %413, %414 : vector<8x32xf32>
    %416 = vector.extract_strided_slice %408 {offsets = [0, 96], sizes = [8, 32], strides = [1, 1]} : vector<8x128xf32> to vector<8x32xf32>
    %417 = arith.mulf %410, %391 : vector<8x32xf32>
    %418 = arith.mulf %409, %415 : vector<8x32xf32>
    %419 = arith.addf %417, %418 : vector<8x32xf32>
    %420 = math.tanh %419 : vector<8x32xf32>
    %421 = arith.mulf %416, %420 : vector<8x32xf32>
    %422 = vector.extract_strided_slice %421 {offsets = [0, 0], sizes = [4, 32], strides = [1, 1]} : vector<8x32xf32> to vector<4x32xf32>
    %423 = arith.addf %395, %422 : vector<4x32xf32>
    %424 = vector.extract_strided_slice %421 {offsets = [4, 0], sizes = [4, 32], strides = [1, 1]} : vector<8x32xf32> to vector<4x32xf32>
    %425 = arith.addf %397, %424 : vector<4x32xf32>
    %426 = arith.truncf %421 : vector<8x32xf32> to vector<8x32xbf16>
    %cst_96 = arith.constant dense<0.000000e+00> : vector<8x256xf32>
    %427 = tpu.matmul %426, %264, %cst_96 {dimension_numbers = #tpu.dot_dimension_numbers<[1], [0], [0], [1], [0, 0, 1, 1], [], []>} : vector<8x32xbf16>, vector<32x256xbf16>, vector<8x256xf32> -> vector<8x256xf32>
    %428 = vector.extract_strided_slice %427 {offsets = [0, 0], sizes = [4, 128], strides = [1, 1]} : vector<8x256xf32> to vector<4x128xf32>
    %429 = vector.extract_strided_slice %427 {offsets = [4, 128], sizes = [4, 128], strides = [1, 1]} : vector<8x256xf32> to vector<4x128xf32>
    %430 = tpu.concatenate %428, %429 in 0 : vector<4x128xf32>, vector<4x128xf32> -> vector<8x128xf32>
    %431 = arith.addf %282, %430 : vector<8x128xf32>
    %432 = arith.negf %431 : vector<8x128xf32>
    %433 = math.exp %432 : vector<8x128xf32>
    %cst_97 = arith.constant 1.000000e+00 : f32
    %434 = vector.broadcast %cst_97 : f32 to vector<8x128xf32>
    %435 = arith.addf %434, %433 : vector<8x128xf32>
    %436 = arith.divf %434, %435 : vector<8x128xf32>
    %437 = vector.extract_strided_slice %436 {offsets = [0, 0], sizes = [8, 32], strides = [1, 1]} : vector<8x128xf32> to vector<8x32xf32>
    %438 = vector.extract_strided_slice %436 {offsets = [0, 32], sizes = [8, 32], strides = [1, 1]} : vector<8x128xf32> to vector<8x32xf32>
    %439 = vector.extract_strided_slice %436 {offsets = [0, 64], sizes = [8, 32], strides = [1, 1]} : vector<8x128xf32> to vector<8x32xf32>
    %cst_98 = arith.constant 2.000000e+00 : f32
    %440 = vector.broadcast %cst_98 : f32 to vector<8x32xf32>
    %441 = arith.mulf %440, %439 : vector<8x32xf32>
    %cst_99 = arith.constant 1.000000e+00 : f32
    %442 = vector.broadcast %cst_99 : f32 to vector<8x32xf32>
    %443 = arith.subf %441, %442 : vector<8x32xf32>
    %444 = vector.extract_strided_slice %436 {offsets = [0, 96], sizes = [8, 32], strides = [1, 1]} : vector<8x128xf32> to vector<8x32xf32>
    %445 = arith.mulf %438, %419 : vector<8x32xf32>
    %446 = arith.mulf %437, %443 : vector<8x32xf32>
    %447 = arith.addf %445, %446 : vector<8x32xf32>
    %448 = math.tanh %447 : vector<8x32xf32>
    %449 = arith.mulf %444, %448 : vector<8x32xf32>
    %450 = vector.extract_strided_slice %449 {offsets = [0, 0], sizes = [4, 32], strides = [1, 1]} : vector<8x32xf32> to vector<4x32xf32>
    %451 = arith.addf %423, %450 : vector<4x32xf32>
    %452 = vector.extract_strided_slice %449 {offsets = [4, 0], sizes = [4, 32], strides = [1, 1]} : vector<8x32xf32> to vector<4x32xf32>
    %453 = arith.addf %425, %452 : vector<4x32xf32>
    %454 = arith.truncf %449 : vector<8x32xf32> to vector<8x32xbf16>
    %cst_100 = arith.constant dense<0.000000e+00> : vector<8x256xf32>
    %455 = tpu.matmul %454, %264, %cst_100 {dimension_numbers = #tpu.dot_dimension_numbers<[1], [0], [0], [1], [0, 0, 1, 1], [], []>} : vector<8x32xbf16>, vector<32x256xbf16>, vector<8x256xf32> -> vector<8x256xf32>
    %456 = vector.extract_strided_slice %455 {offsets = [0, 0], sizes = [4, 128], strides = [1, 1]} : vector<8x256xf32> to vector<4x128xf32>
    %457 = vector.extract_strided_slice %455 {offsets = [4, 128], sizes = [4, 128], strides = [1, 1]} : vector<8x256xf32> to vector<4x128xf32>
    %458 = tpu.concatenate %456, %457 in 0 : vector<4x128xf32>, vector<4x128xf32> -> vector<8x128xf32>
    %459 = arith.addf %285, %458 : vector<8x128xf32>
    %460 = arith.negf %459 : vector<8x128xf32>
    %461 = math.exp %460 : vector<8x128xf32>
    %cst_101 = arith.constant 1.000000e+00 : f32
    %462 = vector.broadcast %cst_101 : f32 to vector<8x128xf32>
    %463 = arith.addf %462, %461 : vector<8x128xf32>
    %464 = arith.divf %462, %463 : vector<8x128xf32>
    %465 = vector.extract_strided_slice %464 {offsets = [0, 0], sizes = [8, 32], strides = [1, 1]} : vector<8x128xf32> to vector<8x32xf32>
    %466 = vector.extract_strided_slice %464 {offsets = [0, 32], sizes = [8, 32], strides = [1, 1]} : vector<8x128xf32> to vector<8x32xf32>
    %467 = vector.extract_strided_slice %464 {offsets = [0, 64], sizes = [8, 32], strides = [1, 1]} : vector<8x128xf32> to vector<8x32xf32>
    %cst_102 = arith.constant 2.000000e+00 : f32
    %468 = vector.broadcast %cst_102 : f32 to vector<8x32xf32>
    %469 = arith.mulf %468, %467 : vector<8x32xf32>
    %cst_103 = arith.constant 1.000000e+00 : f32
    %470 = vector.broadcast %cst_103 : f32 to vector<8x32xf32>
    %471 = arith.subf %469, %470 : vector<8x32xf32>
    %472 = vector.extract_strided_slice %464 {offsets = [0, 96], sizes = [8, 32], strides = [1, 1]} : vector<8x128xf32> to vector<8x32xf32>
    %473 = arith.mulf %466, %447 : vector<8x32xf32>
    %474 = arith.mulf %465, %471 : vector<8x32xf32>
    %475 = arith.addf %473, %474 : vector<8x32xf32>
    %476 = math.tanh %475 : vector<8x32xf32>
    %477 = arith.mulf %472, %476 : vector<8x32xf32>
    %478 = vector.extract_strided_slice %477 {offsets = [0, 0], sizes = [4, 32], strides = [1, 1]} : vector<8x32xf32> to vector<4x32xf32>
    %479 = arith.addf %451, %478 : vector<4x32xf32>
    %480 = vector.extract_strided_slice %477 {offsets = [4, 0], sizes = [4, 32], strides = [1, 1]} : vector<8x32xf32> to vector<4x32xf32>
    %481 = arith.addf %453, %480 : vector<4x32xf32>
    %482 = arith.truncf %477 : vector<8x32xf32> to vector<8x32xbf16>
    %cst_104 = arith.constant dense<0.000000e+00> : vector<8x256xf32>
    %483 = tpu.matmul %482, %264, %cst_104 {dimension_numbers = #tpu.dot_dimension_numbers<[1], [0], [0], [1], [0, 0, 1, 1], [], []>} : vector<8x32xbf16>, vector<32x256xbf16>, vector<8x256xf32> -> vector<8x256xf32>
    %484 = vector.extract_strided_slice %483 {offsets = [0, 0], sizes = [4, 128], strides = [1, 1]} : vector<8x256xf32> to vector<4x128xf32>
    %485 = vector.extract_strided_slice %483 {offsets = [4, 128], sizes = [4, 128], strides = [1, 1]} : vector<8x256xf32> to vector<4x128xf32>
    %486 = tpu.concatenate %484, %485 in 0 : vector<4x128xf32>, vector<4x128xf32> -> vector<8x128xf32>
    %487 = arith.addf %288, %486 : vector<8x128xf32>
    %488 = arith.negf %487 : vector<8x128xf32>
    %489 = math.exp %488 : vector<8x128xf32>
    %cst_105 = arith.constant 1.000000e+00 : f32
    %490 = vector.broadcast %cst_105 : f32 to vector<8x128xf32>
    %491 = arith.addf %490, %489 : vector<8x128xf32>
    %492 = arith.divf %490, %491 : vector<8x128xf32>
    %493 = vector.extract_strided_slice %492 {offsets = [0, 0], sizes = [8, 32], strides = [1, 1]} : vector<8x128xf32> to vector<8x32xf32>
    %494 = vector.extract_strided_slice %492 {offsets = [0, 32], sizes = [8, 32], strides = [1, 1]} : vector<8x128xf32> to vector<8x32xf32>
    %495 = vector.extract_strided_slice %492 {offsets = [0, 64], sizes = [8, 32], strides = [1, 1]} : vector<8x128xf32> to vector<8x32xf32>
    %cst_106 = arith.constant 2.000000e+00 : f32
    %496 = vector.broadcast %cst_106 : f32 to vector<8x32xf32>
    %497 = arith.mulf %496, %495 : vector<8x32xf32>
    %cst_107 = arith.constant 1.000000e+00 : f32
    %498 = vector.broadcast %cst_107 : f32 to vector<8x32xf32>
    %499 = arith.subf %497, %498 : vector<8x32xf32>
    %500 = vector.extract_strided_slice %492 {offsets = [0, 96], sizes = [8, 32], strides = [1, 1]} : vector<8x128xf32> to vector<8x32xf32>
    %501 = arith.mulf %494, %475 : vector<8x32xf32>
    %502 = arith.mulf %493, %499 : vector<8x32xf32>
    %503 = arith.addf %501, %502 : vector<8x32xf32>
    %504 = math.tanh %503 : vector<8x32xf32>
    %505 = arith.mulf %500, %504 : vector<8x32xf32>
    %506 = vector.extract_strided_slice %505 {offsets = [0, 0], sizes = [4, 32], strides = [1, 1]} : vector<8x32xf32> to vector<4x32xf32>
    %507 = arith.addf %479, %506 : vector<4x32xf32>
    %508 = vector.extract_strided_slice %505 {offsets = [4, 0], sizes = [4, 32], strides = [1, 1]} : vector<8x32xf32> to vector<4x32xf32>
    %509 = arith.addf %481, %508 : vector<4x32xf32>
    %510 = tpu.concatenate %507, %509 in 1 : vector<4x32xf32>, vector<4x32xf32> -> vector<4x64xf32>
    %cst_108 = arith.constant 1.250000e-01 : f32
    %511 = vector.broadcast %cst_108 : f32 to vector<4x64xf32>
    %512 = arith.mulf %510, %511 : vector<4x64xf32>
    %513 = arith.truncf %512 : vector<4x64xf32> to vector<4x64xbf16>
    %c0_109 = arith.constant 0 : index
    %c0_110 = arith.constant 0 : index
    %514 = vector.load %arg7[%c0_109, %c0_110] : memref<64x64xbf16, #tpu.memory_space<vmem>>, vector<64x64xbf16>
    %cst_111 = arith.constant dense<0.000000e+00> : vector<4x64xf32>
    %515 = tpu.matmul %513, %514, %cst_111 {dimension_numbers = #tpu.dot_dimension_numbers<[1], [0], [0], [1], [0, 0, 1, 1], [], []>} : vector<4x64xbf16>, vector<64x64xbf16>, vector<4x64xf32> -> vector<4x64xf32>
    %c0_112 = arith.constant 0 : index
    %c0_113 = arith.constant 0 : index
    %516 = vector.load %arg8[%c0_112, %c0_113] : memref<1x64xf32, #tpu.memory_space<vmem>>, vector<1x64xf32>
    %517 = vector.broadcast %516 : vector<1x64xf32> to vector<4x64xf32>
    %518 = arith.addf %515, %517 : vector<4x64xf32>
    %519 = math.tanh %518 : vector<4x64xf32>
    %520 = vector.extract_strided_slice %519 {offsets = [0, 0], sizes = [2, 64], strides = [1, 1]} : vector<4x64xf32> to vector<2x64xf32>
    %521 = vector.extract_strided_slice %519 {offsets = [2, 0], sizes = [2, 64], strides = [1, 1]} : vector<4x64xf32> to vector<2x64xf32>
    %522 = arith.mulf %520, %521 : vector<2x64xf32>
    %cst_114 = arith.constant dense<0.000000e+00> : vector<2xf32>
    %523 = vector.multi_reduction <add>, %522, %cst_114 [1] : vector<2x64xf32> to vector<2xf32>
    %524 = vector.shape_cast %523 : vector<2xf32> to vector<2x1xf32>
    %525 = arith.mulf %520, %520 : vector<2x64xf32>
    %cst_115 = arith.constant dense<0.000000e+00> : vector<2xf32>
    %526 = vector.multi_reduction <add>, %525, %cst_115 [1] : vector<2x64xf32> to vector<2xf32>
    %527 = vector.shape_cast %526 : vector<2xf32> to vector<2x1xf32>
    %528 = math.sqrt %527 : vector<2x1xf32>
    %cst_116 = arith.constant 9.99999993E-9 : f32
    %529 = vector.broadcast %cst_116 : f32 to vector<2x1xf32>
    %530 = arith.maximumf %528, %529 : vector<2x1xf32>
    %531 = arith.mulf %521, %521 : vector<2x64xf32>
    %cst_117 = arith.constant dense<0.000000e+00> : vector<2xf32>
    %532 = vector.multi_reduction <add>, %531, %cst_117 [1] : vector<2x64xf32> to vector<2xf32>
    %533 = vector.shape_cast %532 : vector<2xf32> to vector<2x1xf32>
    %534 = math.sqrt %533 : vector<2x1xf32>
    %cst_118 = arith.constant 9.99999993E-9 : f32
    %535 = vector.broadcast %cst_118 : f32 to vector<2x1xf32>
    %536 = arith.maximumf %534, %535 : vector<2x1xf32>
    %537 = arith.mulf %530, %536 : vector<2x1xf32>
    %538 = arith.divf %524, %537 : vector<2x1xf32>
    %c0_119 = arith.constant 0 : index
    %c0_120 = arith.constant 0 : index
    %539 = vector.load %arg9[%c0_119, %c0_120] : memref<2x1xf32, #tpu.memory_space<vmem>>, vector<2x1xf32>
    tpu.vector_store %arg9[%c0_119, %c0_120], %538 {strides = array<i32>} : memref<2x1xf32, #tpu.memory_space<vmem>>, vector<2x1xf32>,
    return
  }
}

</mosaic_0001>

<bundles_post_ra>
// kernel: siamese_forward.1
= control target key start
LH: loop header
LB: loop body
LE: loop exit
PB: predicated region body
PF: predicated region fallthrough
CT: control target
= control target key end

     0   :  { %14 = vsyncpa [#allocation4], 0  ;;  %s2632_s0 = inlined_call_operand.vmem [shape: s32[32,1], index: 0, kind: input, shape index: {}]   ;;  %s2633_s1 = inlined_call_operand.hbm [shape: bf16[32,256], index: 1, kind: input, shape index: {}]   ;;  %s2634_s2 = inlined_call_operand.vmem [shape: f32[1,256], index: 2, kind: input, shape index: {}]   ;;  %s2635_s3 = inlined_call_operand.hbm [shape: bf16[32,256], index: 3, kind: input, shape index: {}]   ;;  %s2636_s4 = inlined_call_operand.vmem [shape: bf16[64,256], index: 4, kind: input, shape index: {}]   ;;  %s2637_s5 = inlined_call_operand.vmem [shape: f32[1,256], index: 5, kind: input, shape index: {}]   ;;  %s2638_s6 = inlined_call_operand.hbm [shape: bf16[32,256], index: 6, kind: input, shape index: {}]   ;;  %s2639_s7 = inlined_call_operand.hbm [shape: bf16[64,64], index: 7, kind: input, shape index: {}]   ;;  %s2640_s8 = inlined_call_operand.vmem [shape: f32[1,64], index: 8, kind: input, shape index: {}]   ;;  %s2641_s9 = inlined_call_operand.vmem [shape: f32[2,1], index: 9, kind: output, shape index: {}]  }
   0x1   :  { %15 = vsyncpa [#allocation6], 0 }
   0x2   :  { %16 = vsyncpa [#allocation9], 0  ;;  %s2113_s30 = smov [#allocation5]   ;;  %s2114_s11 = smov [#allocation3]  }
   0x3   :  { %s38_s10 = sshll.u32 %s2113_s30, 4  ;;  %s24_s12 = sshll.u32 %s2114_s11, 4  ;;  %s39_s10 = int_to_ptr.vmem [resolvable:$true] %s38_s10  ;;  %s2175_s12 = int_to_ptr.vmem [resolvable:$true] %s24_s12 }
   0x4   :  { %s2019_s15 = scalar_lea.hbm %s2635_s3, 512 }
   0x5   :  { %p2020_p0 = scmp.ne.s32.totalorder %s2635_s3, %s2019_s15  ;;  %p2023_p1 = scmp.lt.u32.totalorder %s2019_s15, %s2635_s3 }
   0x7   :  { %p2025_p2 = pnand %p2023_p1, %p2020_p0 }
   0x9   :  { %2028 = shalt.err (!%p2025_p2)
}
   0xa   :  { %s2029_s20 = scalar_lea.vmem %s39_s10, 512  ;;  %p2034_p4 = scmp.lt.s32.totalorder %s39_s10, %s39_s10 }
   0xb   :  { %p2030_p3 = scmp.ne.s32.totalorder %s39_s10, %s2029_s20  ;;  %p2035_p5 = scmp.lt.s32.totalorder %s2029_s20, %s2029_s20 }
   0xd   :  { %p2036_p6 = por %p2035_p5, %p2034_p4 }
   0xf   :  { %p2037_p7 = pnand %p2036_p6, %p2030_p3 }
  0x11   :  { %2040 = shalt.err (!%p2037_p7)
}
  0x12   :  { %s2115_s21 = smov 128   ;;  %s2116_s22 = smov 8  }
  0x13   :  { %44 = dma.hbm_to_vmem [thread:$0]  %s2635_s3, 512, %s39_s10, [#allocation6], %s2115_s21, %s2115_s21, %s2116_s22  }
  0x14   :  { %s2041_s27 = scalar_lea.hbm %s2633_s1, 512 }
  0x15   :  { %p2042_p8 = scmp.ne.s32.totalorder %s2633_s1, %s2041_s27  ;;  %p2045_p9 = scmp.lt.u32.totalorder %s2041_s27, %s2633_s1 }
  0x17   :  { %p2047_p10 = pnand %p2045_p9, %p2042_p8 }
  0x19   :  { %2050 = shalt.err (!%p2047_p10)
}
  0x1a   :  { %s2051_s13 = scalar_lea.vmem %s2175_s12, 512  ;;  %p2056_p12 = scmp.lt.s32.totalorder %s2175_s12, %s2175_s12 }
  0x1b   :  { %p2052_p11 = scmp.ne.s32.totalorder %s2175_s12, %s2051_s13  ;;  %p2057_p13 = scmp.lt.s32.totalorder %s2051_s13, %s2051_s13 }
  0x1d   :  { %p2058_p0 = por %p2057_p13, %p2056_p12 }
  0x1f   :  { %p2059_p1 = pnand %p2058_p0, %p2052_p11 }
  0x21   :  { %2062 = shalt.err (!%p2059_p1)
}
  0x22   :  { %30 = dma.hbm_to_vmem [thread:$0]  %s2633_s1, 512, %s2175_s12, [#allocation4], %s2115_s21, %s2115_s21, %s2116_s22  }
  0x23   :  { %s2117_s14 = smov [#allocation7]   ;;  %s2118_s16 = smov [#allocation8]  }
  0x24   :  { %s54_s15 = sshll.u32 %s2117_s14, 4  ;;  %s66_s17 = sshll.u32 %s2118_s16, 4  ;;  %s55_s15 = int_to_ptr.vmem [resolvable:$true] %s54_s15  ;;  %s2212_s17 = int_to_ptr.vmem [resolvable:$true] %s66_s17 }
  0x25   :  { %s2063_s20 = scalar_lea.hbm %s2638_s6, 512 }
  0x26   :  { %p2064_p2 = scmp.ne.s32.totalorder %s2638_s6, %s2063_s20  ;;  %p2067_p3 = scmp.lt.u32.totalorder %s2063_s20, %s2638_s6 }
  0x28   :  { %p2069_p4 = pnand %p2067_p3, %p2064_p2 }
  0x2a   :  { %2072 = shalt.err (!%p2069_p4)
}
  0x2b   :  { %s2073_s1 = scalar_lea.vmem %s55_s15, 512  ;;  %p2078_p6 = scmp.lt.s32.totalorder %s55_s15, %s55_s15 }
  0x2c   :  { %p2074_p5 = scmp.ne.s32.totalorder %s55_s15, %s2073_s1  ;;  %p2079_p7 = scmp.lt.s32.totalorder %s2073_s1, %s2073_s1 }
  0x2e   :  { %p2080_p8 = por %p2079_p7, %p2078_p6 }
  0x30   :  { %p2081_p9 = pnand %p2080_p8, %p2074_p5 }
  0x32   :  { %2084 = shalt.err (!%p2081_p9)
}
  0x33   :  { %60 = dma.hbm_to_vmem [thread:$0]  %s2638_s6, 512, %s55_s15, [#allocation6], %s2115_s21, %s2115_s21, %s2116_s22  }
  0x34   :  { %s2085_s30 = scalar_lea.hbm %s2639_s7, 512 }
  0x35   :  { %p2086_p10 = scmp.ne.s32.totalorder %s2639_s7, %s2085_s30  ;;  %p2089_p11 = scmp.lt.u32.totalorder %s2085_s30, %s2639_s7 }
  0x37   :  { %p2091_p12 = pnand %p2089_p11, %p2086_p10 }
  0x39   :  { %2094 = shalt.err (!%p2091_p12)
}
  0x3a   :  { %s2095_s14 = scalar_lea.vmem %s2212_s17, 512  ;;  %p2100_p0 = scmp.lt.s32.totalorder %s2212_s17, %s2212_s17 }
  0x3b   :  { %p2096_p13 = scmp.ne.s32.totalorder %s2212_s17, %s2095_s14  ;;  %p2101_p1 = scmp.lt.s32.totalorder %s2095_s14, %s2095_s14 }
  0x3d   :  { %p2102_p2 = por %p2101_p1, %p2100_p0 }
  0x3f   :  { %p2103_p3 = pnand %p2102_p2, %p2096_p13 }
  0x41   :  { %2106 = shalt.err (!%p2103_p3)
}
  0x42   :  { %s2119_s6 = smov 64   ;;  %s2120_s21 = smov 4  }
  0x43   :  { %72 = dma.hbm_to_vmem [thread:$0]  %s2639_s7, 512, %s2212_s17, [#allocation9], %s2119_s6, %s2119_s6, %s2120_s21  }
  0x44   :  { %2107 = dma.done.wait [#allocation4], 512  }
  0x45   :  { %2108 = vsyncadd [#allocation4], 4294966784 }
  0x46   :  { %2109 = dma.done.wait [#allocation6], 1024  }
  0x47   :  { %2110 = vsyncadd [#allocation6], 4294966272 }
  0x48   :  { %2111 = dma.done.wait [#allocation9], 512  }
  0x49   :  { %2112 = vsyncadd [#allocation9], 4294966784  ;;  %v2121_v0 = vmov 0   ;;  %v88_v1 = vld [vmem:[%s2632_s0] sm:$0xff]  ;;  %v90_v2 = vld [vmem:[%s2632_s0 + $0x10] sm:$0xff]  ;;  %v92_v9 = vlaneseq  ;;  %v2122_v14 = vmov 0.0  }
  0x4a   :  { %1879 = vset.pattern.permute.xlu0 %v2121_v0  ;;  %1880 = vset.pattern.permute.xlu1 %v2121_v0  ;;  %v89_v3 = vld [vmem:[%s2632_s0 + $0x8] sm:$0xff]  ;;  %v91_v4 = vld [vmem:[%s2632_s0 + $0x18] sm:$0xff]  ;;  %vm152_vm2 = vcmask 261120   ;;  %v120_v24 = vld [vmem:[%s2634_s2] sm:$0x3]  ;;  %vm216_vm5 = vcmask 1043456  }
  0x4b   :  { %191 = vmatprep.mubr.bf16.mxu0 %v2121_v0  ;;  %344 = vmatprep.mubr.bf16.mxu1 %v2121_v0  ;;  %v1881_v5 = vld [vmem:[#allocation3 + $0x4] ss:$8 sps:$4 sm:$0xff]   ;;  %v1883_v6 = vld [vmem:[#allocation3] ss:$8 sps:$4 sm:$0xff]   ;;  %v1884_v7 = vld [vmem:[#allocation3 + $0x14] ss:$8 sps:$4 sm:$0xff]  }
  0x4c   :  { %95 = vperm.xlu0 %1879, %v88_v1   ;;  %101 = vperm.xlu1 %1880, %v90_v2   ;;  %v1886_v8 = vld [vmem:[#allocation3 + $0x10] ss:$8 sps:$4 sm:$0xff]   ;;  %v93_v10 = vand.u32 127, %v92_v9  ;;  %v2272_v22 = vshrl.u32 %v92_v9, 7  ;;  %s2123_s2 = smov 32   ;;  %vm278_vm6 = vcmask 257024  }
  0x4d   :  { %159 = vmatprep.subr.bf16.mxu0 %v1881_v5  ;;  %v2307_v9 = vld [vmem:[#allocation5] ss:$8 sps:$4 sm:$0xff]   ;;  %vm283_vm7 = vcmask 523524   ;;  %vm959_vm8 = vcmask 523264   ;;  %vm2124_vm9 = vmmov 0   ;;  %vm1747_vm10 = vcmask 519170  }
  0x4e   :  { %160 = vmatpush1.bf16.msra.mxu0 %v1883_v6  ;;  %v128_v23 = vsub.s32 1, %v2272_v22  ;;  %v124_v25 = vsub.s32 0, %v2272_v22  ;;  %vm1731_vm11 = vcmask 517120  }
  0x4f   :  { %161 = vmatprep.subr.bf16.mxu0 %v1884_v7 }
  0x50   :  { %98 = vperm.xlu0 %1879, %v89_v3   ;;  %104 = vperm.xlu1 %1880, %v91_v4   ;;  %v129_v26 = vrot.slane %v120_v24, %v128_v23  ;;  %v125_v28 = vrot.slane %v120_v24, %v124_v25 }
  0x52   :  { %162 = vmatpush1.bf16.msra.mxu0 %v1886_v8  ;;  %v2305_v8 = vld [vmem:[#allocation5 + $0x4] ss:$8 sps:$4 sm:$0xff]  }
  0x53   :  { %312 = vmatprep.subr.bf16.mxu1 %v2305_v8  ;;  %480 = vmatprep.subr.bf16.mxu0 %v2305_v8 }
  0x54   :  { %313 = vmatpush1.bf16.msra.mxu1 %v2307_v9 }
  0xcb   :  { %v96_v11 = vpop.permute.xlu0 %95  ;;  %v102_v12 = vpop.permute.xlu1 %101 }
  0xcc   :  { %vm106_vm0 = vcmp.eq.s32.totalorder %v93_v10, %v96_v11  ;;  %vm108_vm3 = vcmp.eq.s32.totalorder %v93_v10, %v102_v12  ;;  %v2314_v11 = vld [vmem:[#allocation5 + $0x10] ss:$8 sps:$4 sm:$0xff]  }
  0xcd   :  { %v110_v15 = vsel %vm106_vm0, 1.0, %v2122_v14  ;;  %v112_v19 = vsel %vm108_vm3, 1.0, %v2122_v14  ;;  %vm1765_vm0 = vcmask 1024  }
  0xcf   :  { %v99_v13 = vpop.permute.xlu0 %98  ;;  %v105_v17 = vpop.permute.xlu1 %104 }
  0xd0   :  { %vm107_vm1 = vcmp.eq.s32.totalorder %v93_v10, %v99_v13  ;;  %vm109_vm4 = vcmp.eq.s32.totalorder %v93_v10, %v105_v17  ;;  %v2309_v10 = vld [vmem:[#allocation5 + $0x14] ss:$8 sps:$4 sm:$0xff]  }
  0xd1   :  { %v111_v16 = vsel %vm107_vm1, 1.0, %v2122_v14  ;;  %v113_v20 = vsel %vm109_vm4, 1.0, %v2122_v14  ;;  %314 = vmatprep.subr.bf16.mxu1 %v2309_v10 }
  0xd2   :  { %v114_v18 = vpack.c.bf16 %v111_v16, %v110_v15  ;;  %v115_v21 = vpack.c.bf16 %v113_v20, %v112_v19  ;;  %315 = vmatpush1.bf16.msra.mxu1 %v2314_v11 }
  0xd3   :  { %396 = vmatprep.subr.bf16.mxu1 %v2305_v8 }
  0xd4   :  { %1778 = vmatmul.mubr.msk.bf16.vlgmr.msra.gmra.mrb[0].mxu0 %vm152_vm2, %v114_v18 }
  0xd5   :  { %201 = vmatprep.mubr.bf16.mxu0 %v2121_v0  ;;  %481 = vmatpush1.bf16.msra.mxu0 %v2307_v9 }
  0xd6   :  { %482 = vmatprep.subr.bf16.mxu0 %v2309_v10 }
  0xd9   :  { %483 = vmatpush1.bf16.msra.mxu0 %v2314_v11 }
  0xda   :  { %648 = vmatprep.subr.bf16.mxu0 %v2305_v8 }
  0xdc   :  { %1779 = vmatmul.mubr.msk.bf16.gmra.mrb[4].mxu0 %vm152_vm2, %v115_v21 }
  0xdd   :  { %512 = vmatprep.mubr.bf16.mxu0 %v2121_v0 }
 0x1a7   :  { %v193_v27 = vpop.f32.mrb[0].mxu0 }
 0x1a8   :  { %v195_v29 = vpop.f32.mrb[1].mxu0  ;;  %v194_v38 = vadd.f32 %v193_v27, %v125_v28 }
 0x1a9   :  { %v196_v30 = vadd.f32 %v195_v29, %v129_v26  ;;  %v197_v31 = vpop.f32.mrb[2].mxu0 }
 0x1aa   :  { %v198_v32 = vadd.f32 %v197_v31, %v125_v28  ;;  %v199_v33 = vpop.f32.mrb[3].mxu0  ;;  %v219_v54 = vrot.slane %v194_v38, 4 }
 0x1ab   :  { %v200_v34 = vadd.f32 %v199_v33, %v129_v26  ;;  %v246_v50 = vrot.slane %v196_v30, 4 }
 0x1ac   :  { %v227_v46 = vrot.slane %v198_v32, 4 }
 0x1ad   :  { %v238_v41 = vrot.slane %v200_v34, 4 }
 0x1af   :  { %v203_v35 = vpop.f32.mrb[4].mxu0 }
 0x1b0   :  { %v204_v36 = vadd.f32 %v203_v35, %v125_v28  ;;  %v205_v37 = vpop.f32.mrb[5].mxu0 }
 0x1b1   :  { %v206_v39 = vadd.f32 %v205_v37, %v129_v26  ;;  %v207_v40 = vpop.f32.mrb[6].mxu0 }
 0x1b2   :  { %v235_v42 = vrot.slane %v204_v36, 4  ;;  %v208_v43 = vadd.f32 %v207_v40, %v125_v28  ;;  %v209_v44 = vpop.f32.mrb[7].mxu0  ;;  %v2284_v45 = vsel %vm216_vm5, %v204_v36, %v200_v34 }
 0x1b3   :  { %v230_v47 = vrot.slane %v206_v39, 4  ;;  %v210_v48 = vadd.f32 %v209_v44, %v129_v26  ;;  %v2287_v49 = vsel %vm216_vm5, %v198_v32, %v206_v39 }
 0x1b4   :  { %v243_v51 = vrot.slane %v208_v43, 4  ;;  %v2290_v52 = vsel %vm216_vm5, %v235_v42, %v238_v41  ;;  %v2293_v53 = vsel %vm216_vm5, %v208_v43, %v196_v30 }
 0x1b5   :  { %v217_v55 = vsel %vm216_vm5, %v194_v38, %v210_v48  ;;  %v222_v56 = vrot.slane %v210_v48, 4  ;;  %v2297_v57 = vsel %vm216_vm5, %v227_v46, %v230_v47 }
 0x1b6   :  { %v1780_v58 = vmul.f32 -1.442695, %v217_v55  ;;  %v2300_v59 = vsel %vm216_vm5, %v243_v51, %v246_v50 }
 0x1b7   :  { %v224_v60 = vsel %vm216_vm5, %v219_v54, %v222_v56 }
 0x1b8   :  { %1915 = vpow2.f32 %v1780_v58 }
 0x1c2   :  { %v1916_v61 = vpop.eup %1915 }
 0x1c3   :  { %v252_v62 = vadd.f32 1.0, %v1916_v61 }
 0x1c5   :  { %1917 = vrcp.f32 %v252_v62 }
 0x1cf   :  { %v1918_v63 = vpop.eup %1917 }
 0x1d0   :  { %v255_v1 = vmul.f32 2.0, %v1918_v63  ;;  %v257_v5 = vmul.f32 0.0, %v1918_v63 }
 0x1d2   :  { %v1781_v2 = vadd.f32 -1.0, %v255_v1 }
 0x1d4   :  { %259 = vrot.lane.b32.xlu0 %v1781_v2, %s2119_s6 }
 0x246   :  { %v260_v3 = vpop.permute.xlu0 %259 }
 0x247   :  { %v262_v4 = vmul.f32 %v1918_v63, %v260_v3 }
 0x249   :  { %264 = vrot.lane.b32.xlu1 %v262_v4, %s2123_s2 }
 0x2bb   :  { %v265_v6 = vpop.permute.xlu1 %264 }
 0x2bc   :  { %v267_v7 = vadd.f32 %v265_v6, %v257_v5 }
 0x2be   :  { %1919 = vtanh.f32 %v267_v7 }
 0x2c8   :  { %v1920_v12 = vpop.eup %1919 }
 0x2c9   :  { %270 = vrot.lane.b32.xlu0 %v1920_v12, %s2119_s6 }
 0x33b   :  { %v271_v13 = vpop.permute.xlu0 %270 }
 0x33c   :  { %v2324_v15 = vmul.f32 %v1918_v63, %v271_v13 }
 0x33e   :  { %v285_v16 = vpack.c.bf16 %v2324_v15, %v2324_v15 }
 0x340   :  { %287 = vrot.lane.b32.xlu1 %v285_v16, %s2123_s2 }
 0x3b2   :  { %v288_v17 = vpop.permute.xlu1 %287 }
 0x3b3   :  { %1786 = vmatmul.mubr.msk.bf16.vlgmr.msra.gmra.mrb[0].mxu1 %vm152_vm2, %v288_v17 }
 0x3b4   :  { %397 = vmatpush1.bf16.msra.mxu1 %v2307_v9  ;;  %428 = vmatprep.mubr.bf16.mxu1 %v2121_v0 }
 0x3b5   :  { %398 = vmatprep.subr.bf16.mxu1 %v2309_v10 }
 0x3b8   :  { %399 = vmatpush1.bf16.msra.mxu1 %v2314_v11 }
 0x3b9   :  { %564 = vmatprep.subr.bf16.mxu1 %v2305_v8 }
 0x486   :  { %v346_v18 = vpop.f32.mrb[0].mxu1 }
 0x487   :  { %v348_v19 = vpop.f32.mrb[1].mxu1 }
 0x488   :  { %v353_v20 = vsel %vm216_vm5, %v346_v18, %v348_v19  ;;  %v350_v21 = vpop.f32.mrb[2].mxu1 }
 0x489   :  { %v354_v24 = vadd.f32 %v353_v20, %v224_v60  ;;  %v351_v26 = vpop.f32.mrb[3].mxu1 }
 0x48b   :  { %v1787_v27 = vmul.f32 -1.442695, %v354_v24 }
 0x48d   :  { %1921 = vpow2.f32 %v1787_v27 }
 0x497   :  { %v1922_v28 = vpop.eup %1921 }
 0x498   :  { %v358_v29 = vadd.f32 1.0, %v1922_v28 }
 0x49a   :  { %1923 = vrcp.f32 %v358_v29 }
 0x4a4   :  { %v1924_v30 = vpop.eup %1923 }
 0x4a5   :  { %v361_v31 = vmul.f32 2.0, %v1924_v30  ;;  %v363_v35 = vmul.f32 %v1924_v30, %v267_v7 }
 0x4a7   :  { %v1788_v32 = vadd.f32 -1.0, %v361_v31 }
 0x4a9   :  { %365 = vrot.lane.b32.xlu0 %v1788_v32, %s2119_s6 }
 0x51b   :  { %v366_v33 = vpop.permute.xlu0 %365 }
 0x51c   :  { %v368_v34 = vmul.f32 %v1924_v30, %v366_v33 }
 0x51e   :  { %370 = vrot.lane.b32.xlu1 %v368_v34, %s2123_s2 }
 0x590   :  { %v371_v36 = vpop.permute.xlu1 %370 }
 0x591   :  { %v373_v37 = vadd.f32 %v371_v36, %v363_v35 }
 0x593   :  { %1925 = vtanh.f32 %v373_v37 }
 0x59d   :  { %v1926_v38 = vpop.eup %1925 }
 0x59e   :  { %376 = vrot.lane.b32.xlu0 %v1926_v38, %s2119_s6 }
 0x610   :  { %v377_v39 = vpop.permute.xlu0 %376 }
 0x611   :  { %v2339_v40 = vmul.f32 %v1924_v30, %v377_v39 }
 0x613   :  { %v389_v41 = vpack.c.bf16 %v2339_v40, %v2339_v40 }
 0x615   :  { %391 = vrot.lane.b32.xlu1 %v389_v41, %s2123_s2 }
 0x687   :  { %v392_v42 = vpop.permute.xlu1 %391 }
 0x688   :  { %1789 = vmatmul.mubr.msk.bf16.vlgmr.msra.gmra.mrb[4].mxu1 %vm152_vm2, %v392_v42 }
 0x689   :  { %565 = vmatpush1.bf16.msra.mxu1 %v2307_v9  ;;  %596 = vmatprep.mubr.bf16.mxu1 %v2121_v0 }
 0x68a   :  { %566 = vmatprep.subr.bf16.mxu1 %v2309_v10 }
 0x68d   :  { %567 = vmatpush1.bf16.msra.mxu1 %v2314_v11 }
 0x68e   :  { %732 = vmatprep.subr.bf16.mxu1 %v2305_v8 }
 0x75b   :  { %v430_v43 = vpop.f32.mrb[4].mxu1 }
 0x75c   :  { %v432_v44 = vpop.f32.mrb[5].mxu1 }
 0x75d   :  { %v437_v46 = vsel %vm216_vm5, %v430_v43, %v432_v44  ;;  %v434_v47 = vpop.f32.mrb[6].mxu1 }
 0x75e   :  { %v438_v48 = vadd.f32 %v437_v46, %v2287_v49  ;;  %v435_v50 = vpop.f32.mrb[7].mxu1 }
 0x760   :  { %v1790_v51 = vmul.f32 -1.442695, %v438_v48 }
 0x762   :  { %1927 = vpow2.f32 %v1790_v51 }
 0x76c   :  { %v1928_v54 = vpop.eup %1927 }
 0x76d   :  { %v442_v55 = vadd.f32 1.0, %v1928_v54 }
 0x76f   :  { %1929 = vrcp.f32 %v442_v55 }
 0x779   :  { %v1930_v56 = vpop.eup %1929 }
 0x77a   :  { %v445_v58 = vmul.f32 2.0, %v1930_v56  ;;  %v447_v63 = vmul.f32 %v1930_v56, %v373_v37 }
 0x77c   :  { %v1791_v60 = vadd.f32 -1.0, %v445_v58 }
 0x77e   :  { %449 = vrot.lane.b32.xlu0 %v1791_v60, %s2119_s6 }
 0x7f0   :  { %v450_v61 = vpop.permute.xlu0 %449 }
 0x7f1   :  { %v452_v62 = vmul.f32 %v1930_v56, %v450_v61 }
 0x7f3   :  { %454 = vrot.lane.b32.xlu1 %v452_v62, %s2123_s2 }
 0x865   :  { %v455_v1 = vpop.permute.xlu1 %454 }
 0x866   :  { %v457_v2 = vadd.f32 %v455_v1, %v447_v63 }
 0x868   :  { %1931 = vtanh.f32 %v457_v2 }
 0x872   :  { %v1932_v49 = vpop.eup %1931 }
 0x873   :  { %460 = vrot.lane.b32.xlu0 %v1932_v49, %s2119_s6 }
 0x8e5   :  { %v461_v3 = vpop.permute.xlu0 %460 }
 0x8e6   :  { %v2355_v4 = vmul.f32 %v1930_v56, %v461_v3 }
 0x8e8   :  { %v473_v5 = vpack.c.bf16 %v2355_v4, %v2355_v4 }
 0x8ea   :  { %475 = vrot.lane.b32.xlu1 %v473_v5, %s2123_s2 }
 0x95c   :  { %v476_v6 = vpop.permute.xlu1 %475 }
 0x95d   :  { %1792 = vmatmul.mubr.msk.bf16.vlgmr.msra.gmra.mrb[8].mxu0 %vm152_vm2, %v476_v6 }
 0x95e   :  { %649 = vmatpush1.bf16.msra.mxu0 %v2307_v9  ;;  %680 = vmatprep.mubr.bf16.mxu0 %v2121_v0 }
 0x95f   :  { %650 = vmatprep.subr.bf16.mxu0 %v2309_v10 }
 0x962   :  { %651 = vmatpush1.bf16.msra.mxu0 %v2314_v11 }
 0x963   :  { %816 = vmatprep.subr.bf16.mxu0 %v2305_v8 }
 0xa30   :  { %v514_v7 = vpop.f32.mrb[8].mxu0 }
 0xa31   :  { %v516_v12 = vpop.f32.mrb[9].mxu0 }
 0xa32   :  { %v521_v13 = vsel %vm216_vm5, %v514_v7, %v516_v12  ;;  %v518_v16 = vpop.f32.mrb[10].mxu0 }
 0xa33   :  { %v522_v17 = vadd.f32 %v521_v13, %v2297_v57  ;;  %v519_v18 = vpop.f32.mrb[11].mxu0 }
 0xa35   :  { %v1793_v19 = vmul.f32 -1.442695, %v522_v17 }
 0xa37   :  { %1933 = vpow2.f32 %v1793_v19 }
 0xa41   :  { %v1934_v20 = vpop.eup %1933 }
 0xa42   :  { %v526_v21 = vadd.f32 1.0, %v1934_v20 }
 0xa44   :  { %1935 = vrcp.f32 %v526_v21 }
 0xa4e   :  { %v1936_v24 = vpop.eup %1935 }
 0xa4f   :  { %v529_v26 = vmul.f32 2.0, %v1936_v24  ;;  %v531_v29 = vmul.f32 %v1936_v24, %v457_v2 }
 0xa51   :  { %v1794_v27 = vadd.f32 -1.0, %v529_v26 }
 0xa53   :  { %533 = vrot.lane.b32.xlu0 %v1794_v27, %s2119_s6 }
 0xac5   :  { %v534_v28 = vpop.permute.xlu0 %533 }
 0xac6   :  { %v536_v8 = vmul.f32 %v1936_v24, %v534_v28 }
 0xac8   :  { %538 = vrot.lane.b32.xlu1 %v536_v8, %s2123_s2 }
 0xb3a   :  { %v539_v30 = vpop.permute.xlu1 %538 }
 0xb3b   :  { %v541_v31 = vadd.f32 %v539_v30, %v531_v29 }
 0xb3d   :  { %1937 = vtanh.f32 %v541_v31 }
 0xb47   :  { %v1938_v57 = vpop.eup %1937 }
 0xb48   :  { %544 = vrot.lane.b32.xlu0 %v1938_v57, %s2119_s6 }
 0xbba   :  { %v545_v32 = vpop.permute.xlu0 %544 }
 0xbbb   :  { %v2371_v33 = vmul.f32 %v1936_v24, %v545_v32 }
 0xbbd   :  { %v557_v34 = vpack.c.bf16 %v2371_v33, %v2371_v33 }
 0xbbf   :  { %559 = vrot.lane.b32.xlu1 %v557_v34, %s2123_s2 }
 0xc31   :  { %v560_v35 = vpop.permute.xlu1 %559 }
 0xc32   :  { %1795 = vmatmul.mubr.msk.bf16.vlgmr.msra.gmra.mrb[8].mxu1 %vm152_vm2, %v560_v35 }
 0xc33   :  { %733 = vmatpush1.bf16.msra.mxu1 %v2307_v9  ;;  %764 = vmatprep.mubr.bf16.mxu1 %v2121_v0 }
 0xc34   :  { %734 = vmatprep.subr.bf16.mxu1 %v2309_v10 }
 0xc37   :  { %735 = vmatpush1.bf16.msra.mxu1 %v2314_v11 }
 0xd05   :  { %v598_v36 = vpop.f32.mrb[8].mxu1 }
 0xd06   :  { %v600_v37 = vpop.f32.mrb[9].mxu1 }
 0xd07   :  { %v605_v38 = vsel %vm216_vm5, %v598_v36, %v600_v37  ;;  %v602_v39 = vpop.f32.mrb[10].mxu1 }
 0xd08   :  { %v606_v41 = vadd.f32 %v605_v38, %v2284_v45  ;;  %v603_v42 = vpop.f32.mrb[11].mxu1 }
 0xd0a   :  { %v1796_v43 = vmul.f32 -1.442695, %v606_v41 }
 0xd0c   :  { %1939 = vpow2.f32 %v1796_v43 }
 0xd16   :  { %v1940_v44 = vpop.eup %1939 }
 0xd17   :  { %v610_v46 = vadd.f32 1.0, %v1940_v44 }
 0xd19   :  { %1941 = vrcp.f32 %v610_v46 }
 0xd23   :  { %v1942_v47 = vpop.eup %1941 }
 0xd24   :  { %v613_v48 = vmul.f32 2.0, %v1942_v47  ;;  %v615_v55 = vmul.f32 %v1942_v47, %v541_v31 }
 0xd26   :  { %v1797_v50 = vadd.f32 -1.0, %v613_v48 }
 0xd28   :  { %617 = vrot.lane.b32.xlu0 %v1797_v50, %s2119_s6 }
 0xd9a   :  { %v618_v51 = vpop.permute.xlu0 %617 }
 0xd9b   :  { %v620_v54 = vmul.f32 %v1942_v47, %v618_v51 }
 0xd9d   :  { %622 = vrot.lane.b32.xlu1 %v620_v54, %s2123_s2 }
 0xe0f   :  { %v623_v56 = vpop.permute.xlu1 %622 }
 0xe10   :  { %v625_v58 = vadd.f32 %v623_v56, %v615_v55 }
 0xe12   :  { %1943 = vtanh.f32 %v625_v58 }
 0xe1c   :  { %v1944_v45 = vpop.eup %1943 }
 0xe1d   :  { %628 = vrot.lane.b32.xlu0 %v1944_v45, %s2119_s6 }
 0xe8f   :  { %v629_v60 = vpop.permute.xlu0 %628 }
 0xe90   :  { %v2386_v61 = vmul.f32 %v1942_v47, %v629_v60 }
 0xe92   :  { %v641_v62 = vpack.c.bf16 %v2386_v61, %v2386_v61 }
 0xe94   :  { %643 = vrot.lane.b32.xlu1 %v641_v62, %s2123_s2 }
 0xf06   :  { %v644_v63 = vpop.permute.xlu1 %643 }
 0xf07   :  { %1798 = vmatmul.mubr.msk.bf16.vlgmr.msra.gmra.mrb[12].mxu0 %vm152_vm2, %v644_v63 }
 0xf08   :  { %817 = vmatpush1.bf16.msra.mxu0 %v2307_v9  ;;  %848 = vmatprep.mubr.bf16.mxu0 %v2121_v0 }
 0xf09   :  { %818 = vmatprep.subr.bf16.mxu0 %v2309_v10 }
 0xf0c   :  { %819 = vmatpush1.bf16.msra.mxu0 %v2314_v11 }
 0xfda   :  { %v682_v1 = vpop.f32.mrb[12].mxu0 }
 0xfdb   :  { %v684_v2 = vpop.f32.mrb[13].mxu0 }
 0xfdc   :  { %v689_v49 = vsel %vm216_vm5, %v682_v1, %v684_v2  ;;  %v686_v3 = vpop.f32.mrb[14].mxu0 }
 0xfdd   :  { %v690_v5 = vadd.f32 %v689_v49, %v2290_v52  ;;  %v687_v6 = vpop.f32.mrb[15].mxu0 }
 0xfdf   :  { %v1799_v7 = vmul.f32 -1.442695, %v690_v5 }
 0xfe1   :  { %1945 = vpow2.f32 %v1799_v7 }
 0xfeb   :  { %v1946_v12 = vpop.eup %1945 }
 0xfec   :  { %v694_v13 = vadd.f32 1.0, %v1946_v12 }
 0xfee   :  { %1947 = vrcp.f32 %v694_v13 }
 0xff8   :  { %v1948_v9 = vpop.eup %1947 }
 0xff9   :  { %v697_v16 = vmul.f32 2.0, %v1948_v9  ;;  %v699_v18 = vmul.f32 %v1948_v9, %v625_v58 }
 0xffb   :  { %v1800_v17 = vadd.f32 -1.0, %v697_v16  ;;  %v1893_v16 = vld [vmem:[%s2636_s4] ss:$8 sps:$4 sm:$0xff]  }
 0xffd   :  { %701 = vrot.lane.b32.xlu0 %v1800_v17, %s2119_s6  ;;  %v1895_v17 = vld [vmem:[%s2636_s4 + $0x4] ss:$8 sps:$4 sm:$0xff]  }
 0xffe   :  { %966 = vmatprep.subr.bf16.mxu1 %v1895_v17 }
0x106f   :  { %v702_v10 = vpop.permute.xlu0 %701 }
0x1070   :  { %v704_v11 = vmul.f32 %v1948_v9, %v702_v10  ;;  %v1898_v10 = vld [vmem:[%s2636_s4 + $0x14] ss:$8 sps:$4 sm:$0xff]  }
0x1072   :  { %706 = vrot.lane.b32.xlu1 %v704_v11, %s2123_s2 }
0x10e4   :  { %v707_v19 = vpop.permute.xlu1 %706 }
0x10e5   :  { %v709_v20 = vadd.f32 %v707_v19, %v699_v18  ;;  %v1896_v18 = vld [vmem:[%s2636_s4 + $0x10] ss:$8 sps:$4 sm:$0xff]   ;;  %v1899_v19 = vld [vmem:[%s2636_s4 + $0x20] ss:$8 sps:$4 sm:$0xff]  }
0x10e7   :  { %1949 = vtanh.f32 %v709_v20 }
0x10f1   :  { %v1950_v52 = vpop.eup %1949 }
0x10f2   :  { %712 = vrot.lane.b32.xlu0 %v1950_v52, %s2119_s6  ;;  %v1902_v52 = vld [vmem:[%s2636_s4 + $0x30] ss:$8 sps:$4 sm:$0xff]  }
0x1164   :  { %v713_v21 = vpop.permute.xlu0 %712 }
0x1165   :  { %v2401_v24 = vmul.f32 %v1948_v9, %v713_v21 }
0x1167   :  { %v725_v26 = vpack.c.bf16 %v2401_v24, %v2401_v24 }
0x1169   :  { %727 = vrot.lane.b32.xlu1 %v725_v26, %s2123_s2 }
0x11db   :  { %v728_v27 = vpop.permute.xlu1 %727 }
0x11dc   :  { %1801 = vmatmul.mubr.msk.bf16.vlgmr.msra.gmra.mrb[12].mxu1 %vm152_vm2, %v728_v27 }
0x11dd   :  { %998 = vmatprep.mubr.bf16.mxu1 %v2121_v0  ;;  %967 = vmatpush1.bf16.msra.mxu1 %v1893_v16 }
0x11de   :  { %968 = vmatprep.subr.bf16.mxu1 %v1898_v10 }
0x11e1   :  { %969 = vmatpush1.bf16.msra.mxu1 %v1896_v18 }
0x12af   :  { %v766_v28 = vpop.f32.mrb[12].mxu1 }
0x12b0   :  { %v768_v8 = vpop.f32.mrb[13].mxu1 }
0x12b1   :  { %v773_v29 = vsel %vm216_vm5, %v766_v28, %v768_v8  ;;  %v770_v30 = vpop.f32.mrb[14].mxu1 }
0x12b2   :  { %v774_v31 = vadd.f32 %v773_v29, %v2293_v53  ;;  %v771_v57 = vpop.f32.mrb[15].mxu1 }
0x12b4   :  { %v1802_v32 = vmul.f32 -1.442695, %v774_v31 }
0x12b6   :  { %1951 = vpow2.f32 %v1802_v32 }
0x12c0   :  { %v1952_v34 = vpop.eup %1951 }
0x12c1   :  { %v778_v35 = vadd.f32 1.0, %v1952_v34 }
0x12c3   :  { %1953 = vrcp.f32 %v778_v35 }
0x12cd   :  { %v1954_v36 = vpop.eup %1953 }
0x12ce   :  { %v781_v37 = vmul.f32 2.0, %v1954_v36  ;;  %v783_v42 = vmul.f32 %v1954_v36, %v709_v20  ;;  %v1901_v20 = vld [vmem:[%s2636_s4 + $0x24] ss:$8 sps:$4 sm:$0xff]  }
0x12cf   :  { %970 = vmatprep.subr.bf16.mxu1 %v1901_v20 }
0x12d0   :  { %v1803_v38 = vadd.f32 -1.0, %v781_v37  ;;  %971 = vmatpush1.bf16.msra.mxu1 %v1899_v19 }
0x12d2   :  { %785 = vrot.lane.b32.xlu0 %v1803_v38, %s2119_s6 }
0x1344   :  { %v786_v39 = vpop.permute.xlu0 %785 }
0x1345   :  { %v788_v41 = vmul.f32 %v1954_v36, %v786_v39 }
0x1347   :  { %790 = vrot.lane.b32.xlu1 %v788_v41, %s2123_s2  ;;  %v907_v41 = vld [vmem:[%s2637_s5] sm:$0x3] }
0x13b9   :  { %v791_v43 = vpop.permute.xlu1 %790 }
0x13ba   :  { %v793_v44 = vadd.f32 %v791_v43, %v783_v42  ;;  %v916_v42 = vrot.slane %v907_v41, %v128_v23 }
0x13bc   :  { %1955 = vtanh.f32 %v793_v44 }
0x13c6   :  { %v1956_v53 = vpop.eup %1955 }
0x13c7   :  { %796 = vrot.lane.b32.xlu0 %v1956_v53, %s2119_s6 }
0x1439   :  { %v797_v46 = vpop.permute.xlu0 %796 }
0x143a   :  { %v799_v47 = vmul.f32 %v1954_v36, %v797_v46 }
0x143c   :  { %v809_v48 = vpack.c.bf16 %v799_v47, %v799_v47 }
0x143e   :  { %811 = vrot.lane.b32.xlu1 %v809_v48, %s2123_s2 }
0x14b0   :  { %v812_v50 = vpop.permute.xlu1 %811 }
0x14b1   :  { %1804 = vmatmul.mubr.msk.bf16.vlgmr.msra.gmra.mrb[16].mxu0 %vm152_vm2, %v812_v50 }
0x14b2   :  { %1140 = vmatprep.mubr.bf16.mxu0 %v2121_v0 }
0x1584   :  { %v850_v51 = vpop.f32.mrb[16].mxu0 }
0x1585   :  { %v852_v54 = vpop.f32.mrb[17].mxu0 }
0x1586   :  { %v857_v55 = vsel %vm216_vm5, %v850_v51, %v852_v54  ;;  %v854_v56 = vpop.f32.mrb[18].mxu0 }
0x1587   :  { %v858_v58 = vadd.f32 %v857_v55, %v2300_v59  ;;  %v855_v45 = vpop.f32.mrb[19].mxu0 }
0x1589   :  { %v1805_v60 = vmul.f32 -1.442695, %v858_v58 }
0x158b   :  { %1957 = vpow2.f32 %v1805_v60 }
0x1595   :  { %v1958_v62 = vpop.eup %1957 }
0x1596   :  { %v862_v63 = vadd.f32 1.0, %v1958_v62 }
0x1598   :  { %1959 = vrcp.f32 %v862_v63 }
0x15a2   :  { %v1960_v1 = vpop.eup %1959 }
0x15a3   :  { %v865_v2 = vmul.f32 2.0, %v1960_v1  ;;  %v867_v59 = vmul.f32 %v1960_v1, %v793_v44  ;;  %v912_v44 = vrot.slane %v907_v41, %v124_v25 }
0x15a5   :  { %v1806_v49 = vadd.f32 -1.0, %v865_v2 }
0x15a7   :  { %869 = vrot.lane.b32.xlu0 %v1806_v49, %s2119_s6 }
0x1619   :  { %v870_v3 = vpop.permute.xlu0 %869 }
0x161a   :  { %v872_v5 = vmul.f32 %v1960_v1, %v870_v3 }
0x161c   :  { %874 = vrot.lane.b32.xlu1 %v872_v5, %s2123_s2 }
0x1620   :  { %275 = vrot.lane.b32.xlu1 %v2324_v15, %s2123_s2 }
0x1624   :  { %465 = vrot.lane.b32.xlu1 %v2355_v4, %s2123_s2 }
0x1628   :  { %637 = vrot.lane.b32.xlu1 %v2386_v61, %s2119_s6 }
0x162c   :  { %805 = vrot.lane.b32.xlu1 %v799_v47, %s2119_s6 }
0x1630   :  { %280 = vrot.lane.b32.xlu1 %v2324_v15, %s2119_s6 }
0x1634   :  { %469 = vrot.lane.b32.xlu1 %v2355_v4, %s2119_s6 }
0x1638   :  { %633 = vrot.lane.b32.xlu1 %v2386_v61, %s2123_s2 }
0x163c   :  { %801 = vrot.lane.b32.xlu1 %v799_v47, %s2123_s2 }
0x168e   :  { %v875_v6 = vpop.permute.xlu1 %874 }
0x168f   :  { %v877_v7 = vadd.f32 %v875_v6, %v867_v59 }
0x1691   :  { %1961 = vtanh.f32 %v877_v7 }
0x1692   :  { %v276_v12 = vpop.permute.xlu1 %275 }
0x1693   :  { %279 = vst.msk [vmem:[#allocation2] sm:$0xf] %vm278_vm6, %v276_v12 }
0x1696   :  { %v466_v13 = vpop.permute.xlu1 %465 }
0x1697   :  { %468 = vst.msk [vmem:[#allocation2 + $0x8] sm:$0xf] %vm278_vm6, %v466_v13 }
0x169a   :  { %v638_v15 = vpop.permute.xlu1 %637 }
0x169b   :  { %v1962_v9 = vpop.eup %1961 }
0x169c   :  { %880 = vrot.lane.b32.xlu0 %v1962_v9, %s2119_s6 }
0x169e   :  { %v806_v4 = vpop.permute.xlu1 %805 }
0x16a0   :  { %381 = vrot.lane.b32.xlu0 %v2339_v40, %s2123_s2 }
0x16a2   :  { %v281_v61 = vpop.permute.xlu1 %280 }
0x16a3   :  { %284 = vst.msk [vmem:[#allocation2 + $0x18] sm:$0xf0] %vm283_vm7, %v281_v61 }
0x16a4   :  { %549 = vrot.lane.b32.xlu0 %v2371_v33, %s2123_s2 }
0x16a6   :  { %v470_v11 = vpop.permute.xlu1 %469 }
0x16a7   :  { %472 = vst.msk [vmem:[#allocation2 + $0x10] sm:$0xf0] %vm283_vm7, %v470_v11 }
0x16a8   :  { %721 = vrot.lane.b32.xlu0 %v2401_v24, %s2119_s6 }
0x16aa   :  { %v634_v28 = vpop.permute.xlu1 %633 }
0x16ac   :  { %385 = vrot.lane.b32.xlu0 %v2339_v40, %s2119_s6  ;;  %v1904_v40 = vld [vmem:[%s2636_s4 + $0x34] ss:$8 sps:$4 sm:$0xff]  }
0x16ad   :  { %972 = vmatprep.subr.bf16.mxu1 %v1904_v40 }
0x16ae   :  { %973 = vmatpush1.bf16.msra.mxu1 %v1902_v52  ;;  %v802_v30 = vpop.permute.xlu1 %801 }
0x16b0   :  { %553 = vrot.lane.b32.xlu0 %v2371_v33, %s2119_s6 }
0x170e   :  { %v881_v33 = vpop.permute.xlu0 %880 }
0x170f   :  { %v883_v21 = vmul.f32 %v1960_v1, %v881_v33 }
0x1711   :  { %889 = vrot.lane.b32.xlu0 %v883_v21, %s2119_s6 }
0x1712   :  { %v382_v26 = vpop.permute.xlu0 %381 }
0x1713   :  { %384 = vst.msk [vmem:[#allocation2 + $0x4] sm:$0xf] %vm278_vm6, %v382_v26  ;;  %v2522_v26 = vld [vmem:[#allocation7 + $0x4] ss:$8 sps:$4 sm:$0xff]  }
0x1714   :  { %808 = vst.msk [vmem:[#allocation2] sm:$0xf0] %vm283_vm7, %v806_v4  ;;  %1108 = vmatprep.subr.bf16.mxu0 %v2522_v26  ;;  %1336 = vmatprep.subr.bf16.mxu1 %v2522_v26 }
0x1715   :  { %717 = vrot.lane.b32.xlu0 %v2401_v24, %s2123_s2 }
0x1716   :  { %v550_v27 = vpop.permute.xlu0 %549 }
0x1717   :  { %552 = vst.msk [vmem:[#allocation2 + $0xc] sm:$0xf] %vm278_vm6, %v550_v27  ;;  %v2524_v27 = vld [vmem:[#allocation7] ss:$8 sps:$4 sm:$0xff]  }
0x1718   :  { %640 = vst.msk [vmem:[#allocation2 + $0x8] sm:$0xf0] %vm283_vm7, %v638_v15  ;;  %1109 = vmatpush1.bf16.msra.mxu0 %v2524_v27 }
0x1719   :  { %885 = vrot.lane.b32.xlu0 %v883_v21, %s2123_s2 }
0x171a   :  { %v722_v8 = vpop.permute.xlu0 %721 }
0x171b   :  { %724 = vst.msk [vmem:[#allocation2 + $0x4] sm:$0xf0] %vm283_vm7, %v722_v8  ;;  %v2531_v8 = vld [vmem:[#allocation7 + $0x10] ss:$8 sps:$4 sm:$0xff]  }
0x171e   :  { %v386_v29 = vpop.permute.xlu0 %385 }
0x171f   :  { %388 = vst.msk [vmem:[#allocation2 + $0x14] sm:$0xf0] %vm283_vm7, %v386_v29 }
0x1720   :  { %804 = vst.msk [vmem:[#allocation2 + $0x18] sm:$0xf] %vm278_vm6, %v802_v30 }
0x1722   :  { %v554_v31 = vpop.permute.xlu0 %553  ;;  %v894_v35 = vld [vmem:[#allocation2 + $0x8] sm:$0xff] }
0x1723   :  { %556 = vst.msk [vmem:[#allocation2 + $0xc] sm:$0xf0] %vm283_vm7, %v554_v31 }
0x1724   :  { %636 = vst.msk [vmem:[#allocation2 + $0x10] sm:$0xf] %vm278_vm6, %v634_v28  ;;  %v2526_v28 = vld [vmem:[#allocation7 + $0x14] ss:$8 sps:$4 sm:$0xff]  }
0x1725   :  { %1110 = vmatprep.subr.bf16.mxu0 %v2526_v28 }
0x1726   :  { %1111 = vmatpush1.bf16.msra.mxu0 %v2531_v8 }
0x1727   :  { %1184 = vmatprep.subr.bf16.mxu0 %v2522_v26 }
0x1783   :  { %v890_v24 = vpop.permute.xlu0 %889 }
0x1784   :  { %892 = vst.msk [vmem:[#allocation2 - $0x4] sm:$0xf0] %vm283_vm7, %v890_v24 }
0x1787   :  { %v718_v57 = vpop.permute.xlu0 %717 }
0x1788   :  { %720 = vst.msk [vmem:[#allocation2 + $0x14] sm:$0xf] %vm278_vm6, %v718_v57 }
0x178b   :  { %v886_v32 = vpop.permute.xlu0 %885  ;;  %v893_v34 = vld [vmem:[#allocation2] sm:$0xff] }
0x178c   :  { %888 = vst.msk [vmem:[#allocation2 + $0x1c] sm:$0xf] %vm278_vm6, %v886_v32  ;;  %v897_v36 = vpack.c.bf16 %v894_v35, %v893_v34 }
0x178e   :  { %1815 = vmatmul.mubr.msk.bf16.vlgmr.msra.gmra.mrb[16].mxu1 %vm959_vm8, %v897_v36 }
0x178f   :  { %1008 = vmatprep.mubr.bf16.mxu1 %v2121_v0  ;;  %v895_v37 = vld [vmem:[#allocation2 + $0x10] sm:$0xff]  ;;  %1337 = vmatpush1.bf16.msra.mxu1 %v2524_v27 }
0x1790   :  { %1338 = vmatprep.subr.bf16.mxu1 %v2526_v28 }
0x1793   :  { %v896_v38 = vld [vmem:[#allocation2 + $0x18] sm:$0xff]  ;;  %1339 = vmatpush1.bf16.msra.mxu1 %v2531_v8 }
0x1794   :  { %v898_v39 = vpack.c.bf16 %v896_v38, %v895_v37  ;;  %1488 = vmatprep.subr.bf16.mxu1 %v2522_v26 }
0x1796   :  { %1816 = vmatmul.mubr.msk.bf16.gmra.mrb[20].mxu1 %vm959_vm8, %v898_v39 }
0x1797   :  { %1368 = vmatprep.mubr.bf16.mxu1 %v2121_v0 }
0x1861   :  { %v1000_v43 = vpop.f32.mrb[16].mxu1 }
0x1862   :  { %v1002_v53 = vpop.f32.mrb[17].mxu1  ;;  %v1001_v58 = vadd.f32 %v1000_v43, %v912_v44 }
0x1863   :  { %v1003_v46 = vadd.f32 %v1002_v53, %v916_v42  ;;  %v1004_v47 = vpop.f32.mrb[18].mxu1 }
0x1864   :  { %v1005_v48 = vadd.f32 %v1004_v47, %v912_v44  ;;  %v1006_v50 = vpop.f32.mrb[19].mxu1  ;;  %v1025_v12 = vrot.slane %v1001_v58, 4 }
0x1865   :  { %v1007_v51 = vadd.f32 %v1006_v50, %v916_v42  ;;  %v1052_v5 = vrot.slane %v1003_v46, 4 }
0x1866   :  { %v1033_v22 = vrot.slane %v1005_v48, 4 }
0x1867   :  { %v1044_v62 = vrot.slane %v1007_v51, 4 }
0x1869   :  { %v1010_v54 = vpop.f32.mrb[20].mxu1 }
0x186a   :  { %v1011_v55 = vadd.f32 %v1010_v54, %v912_v44  ;;  %v1012_v56 = vpop.f32.mrb[21].mxu1 }
0x186b   :  { %v1013_v45 = vadd.f32 %v1012_v56, %v916_v42  ;;  %v1014_v60 = vpop.f32.mrb[22].mxu1 }
0x186c   :  { %v1041_v63 = vrot.slane %v1011_v55, 4  ;;  %v1015_v1 = vadd.f32 %v1014_v60, %v912_v44  ;;  %v1016_v23 = vpop.f32.mrb[23].mxu1  ;;  %v2501_v2 = vsel %vm216_vm5, %v1011_v55, %v1007_v51 }
0x186d   :  { %v1036_v25 = vrot.slane %v1013_v45, 4  ;;  %v1017_v49 = vadd.f32 %v1016_v23, %v916_v42  ;;  %v2504_v3 = vsel %vm216_vm5, %v1005_v48, %v1013_v45 }
0x186e   :  { %v1049_v59 = vrot.slane %v1015_v1, 4  ;;  %v2507_v6 = vsel %vm216_vm5, %v1041_v63, %v1044_v62  ;;  %v2510_v7 = vsel %vm216_vm5, %v1015_v1, %v1003_v46 }
0x186f   :  { %v1023_v13 = vsel %vm216_vm5, %v1001_v58, %v1017_v49  ;;  %v1028_v15 = vrot.slane %v1017_v49, 4  ;;  %v2514_v9 = vsel %vm216_vm5, %v1033_v22, %v1036_v25 }
0x1870   :  { %v1817_v4 = vmul.f32 -1.442695, %v1023_v13  ;;  %v2517_v61 = vsel %vm216_vm5, %v1049_v59, %v1052_v5 }
0x1871   :  { %v1030_v16 = vsel %vm216_vm5, %v1025_v12, %v1028_v15 }
0x1872   :  { %1963 = vpow2.f32 %v1817_v4 }
0x187c   :  { %v1964_v17 = vpop.eup %1963 }
0x187d   :  { %v1058_v10 = vadd.f32 1.0, %v1964_v17 }
0x187f   :  { %1965 = vrcp.f32 %v1058_v10 }
0x1889   :  { %v1966_v11 = vpop.eup %1965 }
0x188a   :  { %v1061_v18 = vmul.f32 2.0, %v1966_v11  ;;  %v1063_v40 = vmul.f32 0.0, %v1966_v11 }
0x188c   :  { %v1818_v19 = vadd.f32 -1.0, %v1061_v18 }
0x188e   :  { %1065 = vrot.lane.b32.xlu1 %v1818_v19, %s2119_s6 }
0x1900   :  { %v1066_v20 = vpop.permute.xlu1 %1065 }
0x1901   :  { %v1068_v52 = vmul.f32 %v1966_v11, %v1066_v20 }
0x1903   :  { %1070 = vrot.lane.b32.xlu0 %v1068_v52, %s2123_s2 }
0x1975   :  { %v1071_v33 = vpop.permute.xlu0 %1070 }
0x1976   :  { %v1073_v21 = vadd.f32 %v1071_v33, %v1063_v40 }
0x1978   :  { %1967 = vtanh.f32 %v1073_v21 }
0x1982   :  { %v1968_v29 = vpop.eup %1967 }
0x1983   :  { %1076 = vrot.lane.b32.xlu1 %v1968_v29, %s2119_s6 }
0x19f5   :  { %v1077_v30 = vpop.permute.xlu1 %1076 }
0x19f6   :  { %v2541_v31 = vmul.f32 %v1966_v11, %v1077_v30 }
0x19f8   :  { %v1081_v24 = vpack.c.bf16 %v2541_v31, %v2541_v31 }
0x19fa   :  { %1083 = vrot.lane.b32.xlu0 %v1081_v24, %s2123_s2 }
0x1a6c   :  { %v1084_v57 = vpop.permute.xlu0 %1083 }
0x1a6d   :  { %1823 = vmatmul.mubr.msk.bf16.vlgmr.msra.gmra.mrb[20].mxu0 %vm152_vm2, %v1084_v57 }
0x1a6e   :  { %1185 = vmatpush1.bf16.msra.mxu0 %v2524_v27  ;;  %1216 = vmatprep.mubr.bf16.mxu0 %v2121_v0 }
0x1a6f   :  { %1186 = vmatprep.subr.bf16.mxu0 %v2526_v28 }
0x1a72   :  { %1187 = vmatpush1.bf16.msra.mxu0 %v2531_v8 }
0x1a73   :  { %1260 = vmatprep.subr.bf16.mxu0 %v2522_v26 }
0x1b40   :  { %v1142_v32 = vpop.f32.mrb[20].mxu0 }
0x1b41   :  { %v1144_v34 = vpop.f32.mrb[21].mxu0 }
0x1b42   :  { %v1149_v35 = vsel %vm216_vm5, %v1142_v32, %v1144_v34  ;;  %v1146_v36 = vpop.f32.mrb[22].mxu0 }
0x1b43   :  { %v1150_v37 = vadd.f32 %v1149_v35, %v1030_v16  ;;  %v1147_v38 = vpop.f32.mrb[23].mxu0 }
0x1b45   :  { %v1824_v39 = vmul.f32 -1.442695, %v1150_v37 }
0x1b47   :  { %1969 = vpow2.f32 %v1824_v39 }
0x1b51   :  { %v1970_v41 = vpop.eup %1969 }
0x1b52   :  { %v1154_v42 = vadd.f32 1.0, %v1970_v41 }
0x1b54   :  { %1971 = vrcp.f32 %v1154_v42 }
0x1b5e   :  { %v1972_v43 = vpop.eup %1971 }
0x1b5f   :  { %v1157_v44 = vmul.f32 2.0, %v1972_v43  ;;  %v1159_v48 = vmul.f32 %v1972_v43, %v1073_v21 }
0x1b61   :  { %v1825_v53 = vadd.f32 -1.0, %v1157_v44 }
0x1b63   :  { %1161 = vrot.lane.b32.xlu1 %v1825_v53, %s2119_s6 }
0x1bd5   :  { %v1162_v46 = vpop.permute.xlu1 %1161 }
0x1bd6   :  { %v1164_v47 = vmul.f32 %v1972_v43, %v1162_v46 }
0x1bd8   :  { %1166 = vrot.lane.b32.xlu0 %v1164_v47, %s2123_s2 }
0x1c4a   :  { %v1167_v50 = vpop.permute.xlu0 %1166 }
0x1c4b   :  { %v1169_v51 = vadd.f32 %v1167_v50, %v1159_v48 }
0x1c4d   :  { %1973 = vtanh.f32 %v1169_v51 }
0x1c57   :  { %v1974_v54 = vpop.eup %1973 }
0x1c58   :  { %1172 = vrot.lane.b32.xlu1 %v1974_v54, %s2119_s6 }
0x1cca   :  { %v1173_v55 = vpop.permute.xlu1 %1172 }
0x1ccb   :  { %v1175_v56 = vmul.f32 %v1972_v43, %v1173_v55 }
0x1ccd   :  { %v1177_v58 = vpack.c.bf16 %v1175_v56, %v1175_v56  ;;  %v1176_v18 = vadd.f32 %v1175_v56, %v2541_v31 }
0x1ccf   :  { %1179 = vrot.lane.b32.xlu0 %v1177_v58, %s2123_s2 }
0x1d41   :  { %v1180_v45 = vpop.permute.xlu0 %1179 }
0x1d42   :  { %1826 = vmatmul.mubr.msk.bf16.vlgmr.msra.gmra.mrb[24].mxu0 %vm152_vm2, %v1180_v45 }
0x1d43   :  { %1261 = vmatpush1.bf16.msra.mxu0 %v2524_v27  ;;  %1292 = vmatprep.mubr.bf16.mxu0 %v2121_v0 }
0x1d44   :  { %1262 = vmatprep.subr.bf16.mxu0 %v2526_v28 }
0x1d47   :  { %1263 = vmatpush1.bf16.msra.mxu0 %v2531_v8 }
0x1d48   :  { %1412 = vmatprep.subr.bf16.mxu0 %v2522_v26 }
0x1e15   :  { %v1218_v60 = vpop.f32.mrb[24].mxu0 }
0x1e16   :  { %v1220_v62 = vpop.f32.mrb[25].mxu0 }
0x1e17   :  { %v1225_v63 = vsel %vm216_vm5, %v1218_v60, %v1220_v62  ;;  %v1222_v1 = vpop.f32.mrb[26].mxu0 }
0x1e18   :  { %v1226_v23 = vadd.f32 %v1225_v63, %v2504_v3  ;;  %v1223_v22 = vpop.f32.mrb[27].mxu0 }
0x1e1a   :  { %v1827_v25 = vmul.f32 -1.442695, %v1226_v23 }
0x1e1c   :  { %1975 = vpow2.f32 %v1827_v25 }
0x1e26   :  { %v1976_v49 = vpop.eup %1975 }
0x1e27   :  { %v1230_v5 = vadd.f32 1.0, %v1976_v49 }
0x1e29   :  { %1977 = vrcp.f32 %v1230_v5 }
0x1e33   :  { %v1978_v59 = vpop.eup %1977 }
0x1e34   :  { %v1233_v12 = vmul.f32 2.0, %v1978_v59  ;;  %v1235_v16 = vmul.f32 %v1978_v59, %v1169_v51 }
0x1e36   :  { %v1828_v13 = vadd.f32 -1.0, %v1233_v12 }
0x1e38   :  { %1237 = vrot.lane.b32.xlu1 %v1828_v13, %s2119_s6 }
0x1eaa   :  { %v1238_v15 = vpop.permute.xlu1 %1237 }
0x1eab   :  { %v1240_v4 = vmul.f32 %v1978_v59, %v1238_v15 }
0x1ead   :  { %1242 = vrot.lane.b32.xlu0 %v1240_v4, %s2123_s2 }
0x1f1f   :  { %v1243_v17 = vpop.permute.xlu0 %1242 }
0x1f20   :  { %v1245_v10 = vadd.f32 %v1243_v17, %v1235_v16 }
0x1f22   :  { %1979 = vtanh.f32 %v1245_v10 }
0x1f2c   :  { %v1980_v3 = vpop.eup %1979 }
0x1f2d   :  { %1248 = vrot.lane.b32.xlu1 %v1980_v3, %s2119_s6 }
0x1f9f   :  { %v1249_v11 = vpop.permute.xlu1 %1248 }
0x1fa0   :  { %v1251_v19 = vmul.f32 %v1978_v59, %v1249_v11 }
0x1fa2   :  { %v1252_v20 = vadd.f32 %v1251_v19, %v1176_v18  ;;  %v1253_v52 = vpack.c.bf16 %v1251_v19, %v1251_v19 }
0x1fa4   :  { %1255 = vrot.lane.b32.xlu0 %v1253_v52, %s2123_s2 }
0x2016   :  { %v1256_v40 = vpop.permute.xlu0 %1255 }
0x2017   :  { %1829 = vmatmul.mubr.msk.bf16.vlgmr.msra.gmra.mrb[28].mxu0 %vm152_vm2, %v1256_v40 }
0x2018   :  { %1413 = vmatpush1.bf16.msra.mxu0 %v2524_v27  ;;  %1444 = vmatprep.mubr.bf16.mxu0 %v2121_v0 }
0x2019   :  { %1414 = vmatprep.subr.bf16.mxu0 %v2526_v28 }
0x201c   :  { %1415 = vmatpush1.bf16.msra.mxu0 %v2531_v8 }
0x201d   :  { %1564 = vmatprep.subr.bf16.mxu0 %v2522_v26 }
0x20ea   :  { %v1294_v33 = vpop.f32.mrb[28].mxu0 }
0x20eb   :  { %v1296_v21 = vpop.f32.mrb[29].mxu0 }
0x20ec   :  { %v1301_v29 = vsel %vm216_vm5, %v1294_v33, %v1296_v21  ;;  %v1298_v30 = vpop.f32.mrb[30].mxu0 }
0x20ed   :  { %v1302_v31 = vadd.f32 %v1301_v29, %v2514_v9  ;;  %v1299_v24 = vpop.f32.mrb[31].mxu0 }
0x20ef   :  { %v1830_v57 = vmul.f32 -1.442695, %v1302_v31 }
0x20f1   :  { %1981 = vpow2.f32 %v1830_v57 }
0x20fb   :  { %v1982_v32 = vpop.eup %1981 }
0x20fc   :  { %v1306_v34 = vadd.f32 1.0, %v1982_v32 }
0x20fe   :  { %1983 = vrcp.f32 %v1306_v34 }
0x2108   :  { %v1984_v35 = vpop.eup %1983 }
0x2109   :  { %v1309_v36 = vmul.f32 2.0, %v1984_v35  ;;  %v1311_v39 = vmul.f32 %v1984_v35, %v1245_v10 }
0x210b   :  { %v1831_v37 = vadd.f32 -1.0, %v1309_v36 }
0x210d   :  { %1313 = vrot.lane.b32.xlu1 %v1831_v37, %s2119_s6 }
0x217f   :  { %v1314_v38 = vpop.permute.xlu1 %1313 }
0x2180   :  { %v1316_v26 = vmul.f32 %v1984_v35, %v1314_v38 }
0x2182   :  { %1318 = vrot.lane.b32.xlu0 %v1316_v26, %s2123_s2 }
0x21f4   :  { %v1319_v41 = vpop.permute.xlu0 %1318 }
0x21f5   :  { %v1321_v42 = vadd.f32 %v1319_v41, %v1311_v39 }
0x21f7   :  { %1985 = vtanh.f32 %v1321_v42 }
0x2201   :  { %v1986_v9 = vpop.eup %1985 }
0x2202   :  { %1324 = vrot.lane.b32.xlu1 %v1986_v9, %s2119_s6 }
0x2274   :  { %v1325_v43 = vpop.permute.xlu1 %1324 }
0x2275   :  { %v1327_v44 = vmul.f32 %v1984_v35, %v1325_v43 }
0x2277   :  { %v1328_v53 = vadd.f32 %v1327_v44, %v1252_v20  ;;  %v1329_v46 = vpack.c.bf16 %v1327_v44, %v1327_v44 }
0x2279   :  { %1331 = vrot.lane.b32.xlu0 %v1329_v46, %s2123_s2 }
0x22eb   :  { %v1332_v47 = vpop.permute.xlu0 %1331 }
0x22ec   :  { %1832 = vmatmul.mubr.msk.bf16.vlgmr.msra.gmra.mrb[24].mxu1 %vm152_vm2, %v1332_v47 }
0x22ed   :  { %1489 = vmatpush1.bf16.msra.mxu1 %v2524_v27  ;;  %1520 = vmatprep.mubr.bf16.mxu1 %v2121_v0 }
0x22ee   :  { %1490 = vmatprep.subr.bf16.mxu1 %v2526_v28 }
0x22f1   :  { %1491 = vmatpush1.bf16.msra.mxu1 %v2531_v8 }
0x22f2   :  { %1855 = vmatprep.subr.bf16.mxu1 %v2122_v14 }
0x23bf   :  { %v1370_v48 = vpop.f32.mrb[24].mxu1 }
0x23c0   :  { %v1372_v50 = vpop.f32.mrb[25].mxu1 }
0x23c1   :  { %v1377_v51 = vsel %vm216_vm5, %v1370_v48, %v1372_v50  ;;  %v1374_v54 = vpop.f32.mrb[26].mxu1 }
0x23c2   :  { %v1378_v55 = vadd.f32 %v1377_v51, %v2501_v2  ;;  %v1375_v56 = vpop.f32.mrb[27].mxu1 }
0x23c4   :  { %v1833_v58 = vmul.f32 -1.442695, %v1378_v55 }
0x23c6   :  { %1987 = vpow2.f32 %v1833_v58 }
0x23d0   :  { %v1988_v45 = vpop.eup %1987 }
0x23d1   :  { %v1382_v60 = vadd.f32 1.0, %v1988_v45 }
0x23d3   :  { %1989 = vrcp.f32 %v1382_v60 }
0x23dd   :  { %v1990_v62 = vpop.eup %1989 }
0x23de   :  { %v1385_v63 = vmul.f32 2.0, %v1990_v62  ;;  %v1387_v25 = vmul.f32 %v1990_v62, %v1321_v42 }
0x23e0   :  { %v1834_v1 = vadd.f32 -1.0, %v1385_v63 }
0x23e2   :  { %1389 = vrot.lane.b32.xlu1 %v1834_v1, %s2119_s6 }
0x2454   :  { %v1390_v23 = vpop.permute.xlu1 %1389 }
0x2455   :  { %v1392_v22 = vmul.f32 %v1990_v62, %v1390_v23 }
0x2457   :  { %1394 = vrot.lane.b32.xlu0 %v1392_v22, %s2123_s2 }
0x24c9   :  { %v1395_v49 = vpop.permute.xlu0 %1394 }
0x24ca   :  { %v1397_v5 = vadd.f32 %v1395_v49, %v1387_v25 }
0x24cc   :  { %1991 = vtanh.f32 %v1397_v5 }
0x24d6   :  { %v1992_v2 = vpop.eup %1991 }
0x24d7   :  { %1400 = vrot.lane.b32.xlu1 %v1992_v2, %s2119_s6 }
0x2549   :  { %v1401_v59 = vpop.permute.xlu1 %1400 }
0x254a   :  { %v1403_v12 = vmul.f32 %v1990_v62, %v1401_v59 }
0x254c   :  { %v1404_v13 = vadd.f32 %v1403_v12, %v1328_v53  ;;  %v1405_v15 = vpack.c.bf16 %v1403_v12, %v1403_v12 }
0x254e   :  { %1407 = vrot.lane.b32.xlu0 %v1405_v15, %s2123_s2 }
0x25c0   :  { %v1408_v4 = vpop.permute.xlu0 %1407 }
0x25c1   :  { %1835 = vmatmul.mubr.msk.bf16.vlgmr.msra.gmra.mrb[32].mxu0 %vm152_vm2, %v1408_v4 }
0x25c2   :  { %1565 = vmatpush1.bf16.msra.mxu0 %v2524_v27  ;;  %1596 = vmatprep.mubr.bf16.mxu0 %v2121_v0 }
0x25c3   :  { %1566 = vmatprep.subr.bf16.mxu0 %v2526_v28 }
0x25c6   :  { %1567 = vmatpush1.bf16.msra.mxu0 %v2531_v8 }
0x2694   :  { %v1446_v16 = vpop.f32.mrb[32].mxu0 }
0x2695   :  { %v1448_v17 = vpop.f32.mrb[33].mxu0 }
0x2696   :  { %v1453_v10 = vsel %vm216_vm5, %v1446_v16, %v1448_v17  ;;  %v1450_v3 = vpop.f32.mrb[34].mxu0  ;;  %v1912_v17 = vld [vmem:[#allocation8 + $0x8] sm:$0xff]  }
0x2697   :  { %v1454_v11 = vadd.f32 %v1453_v10, %v2507_v6  ;;  %v1451_v18 = vpop.f32.mrb[35].mxu0  ;;  %v1913_v3 = vld [vmem:[#allocation8 + $0x10] sm:$0xff]  }
0x2699   :  { %v1836_v19 = vmul.f32 -1.442695, %v1454_v11  ;;  %v1914_v11 = vld [vmem:[#allocation8 + $0x18] sm:$0xff]  }
0x269b   :  { %1993 = vpow2.f32 %v1836_v19 }
0x26a5   :  { %v1994_v20 = vpop.eup %1993 }
0x26a6   :  { %v1458_v52 = vadd.f32 1.0, %v1994_v20 }
0x26a8   :  { %1995 = vrcp.f32 %v1458_v52 }
0x26b2   :  { %v1996_v27 = vpop.eup %1995 }
0x26b3   :  { %v1461_v40 = vmul.f32 2.0, %v1996_v27  ;;  %v1463_v33 = vmul.f32 %v1996_v27, %v1397_v5 }
0x26b5   :  { %v1837_v0 = vadd.f32 -1.0, %v1461_v40 }
0x26b7   :  { %1465 = vrot.lane.b32.xlu1 %v1837_v0, %s2119_s6 }
0x2729   :  { %v1466_v28 = vpop.permute.xlu1 %1465 }
0x272a   :  { %v1468_v8 = vmul.f32 %v1996_v27, %v1466_v28 }
0x272c   :  { %1470 = vrot.lane.b32.xlu0 %v1468_v8, %s2123_s2 }
0x279e   :  { %v1471_v21 = vpop.permute.xlu0 %1470 }
0x279f   :  { %v1473_v29 = vadd.f32 %v1471_v21, %v1463_v33 }
0x27a1   :  { %1997 = vtanh.f32 %v1473_v29 }
0x27ab   :  { %v1998_v6 = vpop.eup %1997 }
0x27ac   :  { %1476 = vrot.lane.b32.xlu1 %v1998_v6, %s2119_s6 }
0x281e   :  { %v1477_v30 = vpop.permute.xlu1 %1476 }
0x281f   :  { %v1479_v31 = vmul.f32 %v1996_v27, %v1477_v30 }
0x2821   :  { %v1480_v24 = vadd.f32 %v1479_v31, %v1404_v13  ;;  %v1481_v57 = vpack.c.bf16 %v1479_v31, %v1479_v31 }
0x2823   :  { %1483 = vrot.lane.b32.xlu0 %v1481_v57, %s2123_s2 }
0x2895   :  { %v1484_v32 = vpop.permute.xlu0 %1483 }
0x2896   :  { %1838 = vmatmul.mubr.msk.bf16.vlgmr.msra.gmra.mrb[28].mxu1 %vm152_vm2, %v1484_v32 }
0x2897   :  { %1863 = vmatprep.mubr.msk.bf16.mxu1 %vm2124_vm9, %v2122_v14 }
0x2969   :  { %v1522_v34 = vpop.f32.mrb[28].mxu1 }
0x296a   :  { %v1524_v35 = vpop.f32.mrb[29].mxu1 }
0x296b   :  { %v1529_v36 = vsel %vm216_vm5, %v1522_v34, %v1524_v35  ;;  %v1526_v37 = vpop.f32.mrb[30].mxu1 }
0x296c   :  { %v1530_v38 = vadd.f32 %v1529_v36, %v2510_v7  ;;  %v1527_v26 = vpop.f32.mrb[31].mxu1 }
0x296e   :  { %v1839_v39 = vmul.f32 -1.442695, %v1530_v38 }
0x2970   :  { %1999 = vpow2.f32 %v1839_v39 }
0x297a   :  { %v2000_v41 = vpop.eup %1999 }
0x297b   :  { %v1534_v42 = vadd.f32 1.0, %v2000_v41 }
0x297d   :  { %2001 = vrcp.f32 %v1534_v42 }
0x2987   :  { %v2002_v9 = vpop.eup %2001 }
0x2988   :  { %v1537_v43 = vmul.f32 2.0, %v2002_v9  ;;  %v1539_v47 = vmul.f32 %v2002_v9, %v1473_v29 }
0x298a   :  { %v1840_v44 = vadd.f32 -1.0, %v1537_v43 }
0x298c   :  { %1541 = vrot.lane.b32.xlu1 %v1840_v44, %s2119_s6 }
0x29fe   :  { %v1542_v53 = vpop.permute.xlu1 %1541 }
0x29ff   :  { %v1544_v46 = vmul.f32 %v2002_v9, %v1542_v53 }
0x2a01   :  { %1546 = vrot.lane.b32.xlu0 %v1544_v46, %s2123_s2 }
0x2a73   :  { %v1547_v48 = vpop.permute.xlu0 %1546 }
0x2a74   :  { %v1549_v50 = vadd.f32 %v1547_v48, %v1539_v47 }
0x2a76   :  { %2003 = vtanh.f32 %v1549_v50 }
0x2a80   :  { %v2004_v7 = vpop.eup %2003 }
0x2a81   :  { %1552 = vrot.lane.b32.xlu1 %v2004_v7, %s2119_s6 }
0x2af3   :  { %v1553_v51 = vpop.permute.xlu1 %1552 }
0x2af4   :  { %v1555_v54 = vmul.f32 %v2002_v9, %v1553_v51 }
0x2af6   :  { %v1556_v55 = vadd.f32 %v1555_v54, %v1480_v24  ;;  %v1557_v56 = vpack.c.bf16 %v1555_v54, %v1555_v54 }
0x2af8   :  { %1559 = vrot.lane.b32.xlu0 %v1557_v56, %s2123_s2 }
0x2b6a   :  { %v1560_v58 = vpop.permute.xlu0 %1559 }
0x2b6b   :  { %1841 = vmatmul.mubr.msk.bf16.vlgmr.msra.gmra.mrb[36].mxu0 %vm152_vm2, %v1560_v58 }
0x2c3e   :  { %v1598_v45 = vpop.f32.mrb[36].mxu0 }
0x2c3f   :  { %v1600_v60 = vpop.f32.mrb[37].mxu0 }
0x2c40   :  { %v1605_v62 = vsel %vm216_vm5, %v1598_v45, %v1600_v60  ;;  %v1602_v63 = vpop.f32.mrb[38].mxu0 }
0x2c41   :  { %v1606_v1 = vadd.f32 %v1605_v62, %v2517_v61  ;;  %v1603_v23 = vpop.f32.mrb[39].mxu0  ;;  %v1911_v61 = vld [vmem:[#allocation8] sm:$0xff]  }
0x2c42   :  { %1856 = vmatpush3.bf16.msra.mxu1 %v1911_v61 }
0x2c43   :  { %v1842_v22 = vmul.f32 -1.442695, %v1606_v1  ;;  %1857 = vmatprep.subr.bf16.mxu1 %v2122_v14 }
0x2c45   :  { %2005 = vpow2.f32 %v1842_v22 }
0x2c46   :  { %1858 = vmatpush3.bf16.msra.mxu1 %v1912_v17 }
0x2c47   :  { %1859 = vmatprep.subr.bf16.mxu1 %v2122_v14 }
0x2c4a   :  { %1860 = vmatpush3.bf16.msra.mxu1 %v1913_v3 }
0x2c4b   :  { %1861 = vmatprep.subr.bf16.mxu1 %v2122_v14  ;;  %v1844_v14 = vld [vmem:[%s2640_s8] ss:$0 sm:$0xff] }
0x2c4e   :  { %1862 = vmatpush3.bf16.msra.mxu1 %v1914_v11 }
0x2c4f   :  { %v2006_v25 = vpop.eup %2005 }
0x2c50   :  { %v1610_v49 = vadd.f32 1.0, %v2006_v25 }
0x2c52   :  { %2007 = vrcp.f32 %v1610_v49 }
0x2c5c   :  { %v2008_v5 = vpop.eup %2007 }
0x2c5d   :  { %v1613_v2 = vmul.f32 2.0, %v2008_v5  ;;  %v1615_v15 = vmul.f32 %v2008_v5, %v1549_v50 }
0x2c5f   :  { %v1843_v59 = vadd.f32 -1.0, %v1613_v2 }
0x2c61   :  { %1617 = vrot.lane.b32.xlu1 %v1843_v59, %s2119_s6 }
0x2cd3   :  { %v1618_v12 = vpop.permute.xlu1 %1617 }
0x2cd4   :  { %v1620_v13 = vmul.f32 %v2008_v5, %v1618_v12 }
0x2cd6   :  { %1622 = vrot.lane.b32.xlu0 %v1620_v13, %s2123_s2 }
0x2d48   :  { %v1623_v4 = vpop.permute.xlu0 %1622 }
0x2d49   :  { %v1625_v16 = vadd.f32 %v1623_v4, %v1615_v15 }
0x2d4b   :  { %2009 = vtanh.f32 %v1625_v16 }
0x2d55   :  { %v2010_v10 = vpop.eup %2009 }
0x2d56   :  { %1628 = vrot.lane.b32.xlu1 %v2010_v10, %s2119_s6 }
0x2dc8   :  { %v1629_v18 = vpop.permute.xlu1 %1628 }
0x2dc9   :  { %v1631_v19 = vmul.f32 %v2008_v5, %v1629_v18 }
0x2dcb   :  { %v1632_v20 = vadd.f32 %v1631_v19, %v1556_v55 }
0x2dcd   :  { %1634 = vrot.lane.b32.xlu0 %v1632_v20, %s2123_s2  ;;  %v1637_v52 = vrot.slane %v1632_v20, 4 }
0x2dcf   :  { %1638 = vrot.lane.b32.xlu1 %v1637_v52, %s2119_s6 }
0x2e3f   :  { %v1635_v27 = vpop.permute.xlu0 %1634 }
0x2e41   :  { %v1639_v40 = vpop.permute.xlu1 %1638 }
0x2e42   :  { %v1641_v0 = vsel %vm152_vm2, %v1635_v27, %v1639_v40 }
0x2e43   :  { %v1642_v28 = vmul.f32 0.125, %v1641_v0 }
0x2e45   :  { %v1643_v8 = vpack.c.bf16 %v1642_v28, %v1642_v28 }
0x2e47   :  { %1864 = vmatmul.mubr.msk.bf16.vlgmr.msra.gmra.mrb[32].mxu1 %vm959_vm8, %v1643_v8 }
0x2f1a   :  { %v1720_v33 = vpop.f32.mrb[32].mxu1 }
0x2f1b   :  { %v1721_v21 = vadd.f32 %v1844_v14, %v1720_v33  ;;  %v1865_v29 = vpop.f32.mrb[33].mxu1 }
0x2f1c   :  { %v1723_v6 = vpop.f32.mrb[34].mxu1 }
0x2f1d   :  { %2011 = vtanh.f32 %v1721_v21  ;;  %v1866_v30 = vpop.f32.mrb[35].mxu1 }
0x2f27   :  { %v2012_v31 = vpop.eup %2011 }
0x2f28   :  { %v1735_v24 = vmul.f32 %v2012_v31, %v2012_v31  ;;  %v1728_v57 = vrot.slane %v2012_v31, 2 }
0x2f2a   :  { %v1748_v32 = vsel %vm1747_vm10, %v1735_v24, 0.0  ;;  %v1736_v34 = vsel %vm1731_vm11, %v1735_v24, 0.0  ;;  %v1730_v35 = vmul.f32 %v2012_v31, %v1728_v57 }
0x2f2b   :  { %1749 = vadd.xlane.f32.xlu0 %v1748_v32  ;;  %1737 = vadd.xlane.f32.xlu1 %v1736_v34 }
0x2f2c   :  { %v1732_v36 = vsel %vm1731_vm11, %v1730_v35, 0.0 }
0x2f2f   :  { %1733 = vadd.xlane.f32.xlu0 %v1732_v36 }
0x2fb8   :  { %v1750_v37 = vpop.xlane.xlu0 %1749  ;;  %v1738_v38 = vpop.xlane.xlu1 %1737 }
0x2fb9   :  { %2013 = vrsqrt.f32 %v1750_v37  ;;  %vm1753_vm12 = vcmp.eq.f32.partialorder %v1750_v37, inf  ;;  %v1756_v42 = vand.u32 2147483648, %v1750_v37  ;;  %vm1755_vm13 = vcmp.eq.f32.partialorder %v1750_v37, 0.0 }
0x2fba   :  { %2015 = vrsqrt.f32 %v1738_v38  ;;  %vm1741_vm14 = vcmp.eq.f32.partialorder %v1738_v38, inf  ;;  %v1744_v44 = vand.u32 2147483648, %v1738_v38  ;;  %vm1743_vm15 = vcmp.eq.f32.partialorder %v1738_v38, 0.0 }
0x2fbc   :  { %v1734_v55 = vpop.xlane.xlu0 %1733 }
0x2fc3   :  { %v2014_v26 = vpop.eup %2013 }
0x2fc4   :  { %v2016_v39 = vpop.eup %2015  ;;  %v1752_v41 = vmul.f32 %v2014_v26, %v1750_v37 }
0x2fc5   :  { %v1740_v9 = vmul.f32 %v2016_v39, %v1738_v38 }
0x2fc6   :  { %v1754_v43 = vsel %vm1753_vm12, %v1750_v37, %v1752_v41 }
0x2fc7   :  { %v1757_v53 = vsel %vm1755_vm13, %v1756_v42, %v1754_v43  ;;  %v1742_v46 = vsel %vm1741_vm14, %v1738_v38, %v1740_v9 }
0x2fc8   :  { %v1758_v47 = vmax.f32 %v1757_v53, 1e-08  ;;  %v1745_v48 = vsel %vm1743_vm15, %v1744_v44, %v1742_v46 }
0x2fc9   :  { %v1746_v50 = vmax.f32 %v1745_v48, 1e-08 }
0x2fca   :  { %v1760_v7 = vrot.slane %v1758_v47, 2 }
0x2fcc   :  { %v1762_v51 = vmul.f32 %v1760_v7, %v1746_v50 }
0x2fce   :  { %2017 = vrcp.f32 %v1762_v51 }
0x2fd8   :  { %v2018_v54 = vpop.eup %2017 }
0x2fd9   :  { %v1764_v56 = vmul.f32 %v2018_v54, %v1734_v55 }
0x2fdb   :  { %1766 = vst.msk [vmem:[%s2641_s9] sm:$0x3] %vm1765_vm0, %v1764_v56 }
0x2fdc   :  { %1771 = vsyncpa [#allocation4], 1 }
0x2fdd   :  { %1772 = vsyncpa [#allocation6], 1 }
0x2fde   :  { %1773 = vsyncpa [#allocation9], 1 }

</bundles_post_ra>
